<compile_context>
chip_gen: v7x
topology: tpu7x:2x2x1
jax: 0.10.0
libtpu: 0.0.40
codegen_flags: <defaults>
</compile_context>

<pallas_src>
import jax
import jax.numpy as jnp
from jax.experimental import pallas as pl
from jax.experimental.pallas import tpu as pltpu

HIDDEN = 32      # hidden_size
VOCAB = 64       # output_size (== embedding vocab)
MAX_LEN = 16     # max_length

# Row offsets inside the (160, 128) lane-dense weight pack.
R_WH = 0 * HIDDEN          # [Whh_r | Whh_z | Whh_n | Wa_h | 0]        (h-side, fused)
R_WX = 1 * HIDDEN          # [Wih_r | Wih_z | Wih_n | 0]               (x-side, fused)
R_WO = 2 * HIDDEN          # [W_out | I_H | 0]                         (out proj + h passthrough)
R_WE = 3 * HIDDEN          # [Wc_e  | 0 | Wa_e | 0]                    (emb-dependent halves)
R_WC = 4 * HIDDEN          # [Wc_a  | 0]                               (enc-side combine half)
WPACK_ROWS = 5 * HIDDEN

# Rows inside the (8, 128) bias pack.
B_PRE, B_H, B_X, B_O = 0, 1, 2, 3

# Lane layout: GRU gates r/z/n at 0:32/32:64/64:96; attention block at 96:112.
A_LANE = 96
# Lane layout of the packed (T, 128) output row.
O_LOGITS, O_HID, O_ATTN = 0, VOCAB, VOCAB + HIDDEN      # 0, 64, 96


def attn_decoder_kernel(tok_ref, hid_ref, enc_ref, emb_ref, w_ref, b_ref,
                        out_ref, tpre_ref):
    H, L, V = HIDDEN, MAX_LEN, VOCAB
    T = tok_ref.shape[0]

    def dotf(a, b):
        return jnp.dot(a, b, preferred_element_type=jnp.float32)

    # ---- loop-invariant ref reads, hoisted out of the unrolled time loop ----
    w_h = w_ref[R_WH:R_WH + H, :]          # (H,128)
    w_x = w_ref[R_WX:R_WX + H, :]          # (H,128)
    w_o = w_ref[R_WO:R_WO + H, :]          # (H,128)
    b_h = b_ref[B_H:B_H + 1, :]            # (1,128) = [b_hr | b_hz | b_hn | 0]
    b_x = b_ref[B_X:B_X + 1, :]            # (1,128) = [b_ir | b_iz | b_in | 0]
    b_o = b_ref[B_O:B_O + 1, :]            # (1,128) = [b_o  | 0]

    # ---- per-call precompute: everything NOT on the serial h-carry chain ----
    # (a) Fold the whole embedding table through the emb-dependent halves of attn
    #     and attn_combine (biases folded) with ONE batched MXU matmul:
    #        tpre[v, 0:32]   = emb[v] @ Wc_e + bc
    #        tpre[v, 96:112] = emb[v] @ Wa_e + ba
    tpre_ref[...] = dotf(emb_ref[...], w_ref[R_WE:R_WE + H, :]) + b_ref[B_PRE:B_PRE + 1, :]
    # (b) Reassociate (attn_w @ enc) @ Wc_a == attn_w @ (enc @ Wc_a): hoist enc matmul.
    enc_ca = dotf(enc_ref[...], w_ref[R_WC:R_WC + H, :])          # (L,128), lanes 0:H live
    # (c) Gather the T precomputed rows (dropout(p=0.1) == identity in eval mode).
    #     Token ids are clamped in-kernel -> the dynamic row read is OOB-safe even if
    #     the caller skips the wrapper's clip.
    pre = []
    for t in range(T):
        tok = jnp.clip(tok_ref[t], 0, V - 1)
        pre.append(tpre_ref[pl.ds(tok, 1), :])                    # (1,128)

    # ---- T fused decode steps, fully unrolled; h carried in registers ----
    h = hid_ref[...]                                              # (1,H)
    for t in range(T):
        # One fused h-side matmul: all three GRU h-gates + the attention h-half.
        h_ext = dotf(h, w_h) + b_h                                # (1,128)

        # attn_weights = softmax(attn(cat(embedded, hidden)))  — exact reciprocal.
        a = pre[t][:, A_LANE:A_LANE + L] + h_ext[:, A_LANE:A_LANE + L]   # (1,L)
        e = jnp.exp(a - jnp.max(a, axis=1, keepdims=True))
        attn_w = e / jnp.sum(e, axis=1, keepdims=True)            # (1,L)

        # attn_combine(cat(embedded, attn_applied)); emb-half precomputed, enc-half hoisted.
        comb = dotf(attn_w, enc_ca)                               # (1,128), lanes 0:H live
        gru_x = pre[t][:, 0:H] + comb[:, 0:H]                     # (1,H)

        # Single-step GRU cell (PyTorch gate order r, z, n); one fused x-side matmul.
        gi = dotf(gru_x, w_x) + b_x                               # (1,128)
        s = gi + h_ext                                            # lanes 0:64 -> r,z pre-acts
        rz = jax.nn.sigmoid(s[:, 0:2 * H])
        r, z = rz[:, 0:H], rz[:, H:2 * H]
        n = jnp.tanh(gi[:, 2 * H:3 * H] + r * h_ext[:, 2 * H:3 * H])
        h_new = (1.0 - z) * n + z * h                             # (1,H)

        # Output projection: h_new @ [W_out | I | 0] + [b_o | 0] = [logits | h_new | 0]
        # -> one full-width 128-lane store; attn_w then overwrites lanes 96:112.
        # Lanes 112:128 stay deterministically zero.
        row = dotf(h_new, w_o) + b_o                              # (1,128)
        out_ref[t:t + 1, :] = row
        out_ref[t:t + 1, O_ATTN:O_ATTN + L] = attn_w
        h = h_new


@jax.jit
def attention_decoder_decode(tokens, hidden, encoder_outputs, packs):
    """Runs T = len(tokens) chained forward passes of AttentionDecoderRNN.

    tokens: (T,) int32, hidden: (1,1,H) f32, encoder_outputs: (L,H) f32.
    Returns (per-step logits (T,1,1,V), final hidden (1,1,H), per-step attn (T,1,L));
    with T == 1 this is exactly the original module's forward.
    """
    T = tokens.shape[0]
    tokens = jnp.clip(tokens.astype(jnp.int32), 0, VOCAB - 1)     # parity clamp (kernel clamps too)
    hidden2d = hidden.reshape(1, HIDDEN).astype(jnp.float32)
    enc = encoder_outputs.astype(jnp.float32)

    vmem = pl.BlockSpec(memory_space=pltpu.MemorySpace.VMEM)
    smem = pl.BlockSpec(memory_space=pltpu.MemorySpace.SMEM)

    packed = pl.pallas_call(
        attn_decoder_kernel,
        out_shape=jax.ShapeDtypeStruct((T, 128), jnp.float32),
        in_specs=[smem, vmem, vmem, vmem, vmem, vmem],
        out_specs=vmem,
        scratch_shapes=[pltpu.VMEM((VOCAB, 128), jnp.float32)],   # folded-embedding table
    )(tokens, hidden2d, enc, packs["emb"], packs["wpack"], packs["bpack"])

    logits = packed[:, O_LOGITS:O_LOGITS + VOCAB].reshape(T, 1, 1, VOCAB)
    attn_w = packed[:, O_ATTN:O_ATTN + MAX_LEN].reshape(T, 1, MAX_LEN)
    final_hidden = packed[T - 1, O_HID:O_HID + HIDDEN].reshape(1, 1, HIDDEN)
    return logits, final_hidden, attn_w


def init_params(key):
    """Original (PyTorch-layout, pre-transposed) parameters: Linear W as (in,out)."""
    ks = jax.random.split(key, 11)

    def w(k, shape):
        return (jax.random.normal(k, shape, jnp.float32) * 0.1).astype(jnp.float32)

    return {
        "emb":   w(ks[0], (VOCAB, HIDDEN)),
        "wa_t":  w(ks[1], (2 * HIDDEN, MAX_LEN)),
        "ba":    w(ks[2], (1, MAX_LEN)),
        "wc_t":  w(ks[3], (2 * HIDDEN, HIDDEN)),
        "bc":    w(ks[4], (1, HIDDEN)),
        "wih_t": w(ks[5], (HIDDEN, 3 * HIDDEN)),
        "bih":   w(ks[6], (1, 3 * HIDDEN)),
        "whh_t": w(ks[7], (HIDDEN, 3 * HIDDEN)),
        "bhh":   w(ks[8], (1, 3 * HIDDEN)),
        "wo_t":  w(ks[9], (HIDDEN, VOCAB)),
        "bo":    w(ks[10], (1, VOCAB)),
    }


def pack_params(p):
    """Re-layout (no arithmetic beyond zero-padding/identity) into lane-dense packs."""
    H, L = HIDDEN, MAX_LEN
    f32 = jnp.float32

    def pad128(x):
        return jnp.pad(x.astype(f32), ((0, 0), (0, 128 - x.shape[1])))

    wa_e, wa_h = p["wa_t"][:H], p["wa_t"][H:]          # (H,L) each
    wc_e, wc_a = p["wc_t"][:H], p["wc_t"][H:]          # (H,H) each

    w_h = pad128(jnp.concatenate([p["whh_t"], wa_h], axis=1))                       # (H,112)
    w_x = pad128(p["wih_t"])                                                        # (H,96)
    w_o = pad128(jnp.concatenate([p["wo_t"], jnp.eye(H, dtype=f32)], axis=1))       # (H,96)
    w_e = pad128(jnp.concatenate([wc_e, jnp.zeros((H, A_LANE - H), f32), wa_e], 1)) # (H,112)
    w_c = pad128(wc_a)                                                              # (H,32)
    wpack = jnp.concatenate([w_h, w_x, w_o, w_e, w_c], axis=0)
    assert wpack.shape == (WPACK_ROWS, 128)

    b_pre = pad128(jnp.concatenate([p["bc"], jnp.zeros((1, A_LANE - H), f32), p["ba"]], 1))
    b_h = pad128(jnp.concatenate([p["bhh"], jnp.zeros((1, L), f32)], axis=1))
    b_x = pad128(p["bih"])
    b_o = pad128(p["bo"])
    bpack = jnp.concatenate([b_pre, b_h, b_x, b_o, jnp.zeros((4, 128), f32)], axis=0)

    return {"emb": p["emb"].astype(f32), "wpack": wpack, "bpack": bpack}


def reference_decode(tokens, hidden, enc, p):
    """Pure-JAX reference: T chained applications of the PyTorch forward."""
    H = HIDDEN
    h = hidden.reshape(1, HIDDEN)
    logits_all, attn_all = [], []
    for t in range(tokens.shape[0]):
        emb = p["emb"][tokens[t]][None, :]
        attn_w = jax.nn.softmax(jnp.concatenate([emb, h], 1) @ p["wa_t"] + p["ba"], axis=1)
        applied = attn_w @ enc
        gru_x = jnp.concatenate([emb, applied], 1) @ p["wc_t"] + p["bc"]
        gi = gru_x @ p["wih_t"] + p["bih"]
        gh = h @ p["whh_t"] + p["bhh"]
        r = jax.nn.sigmoid(gi[:, :H] + gh[:, :H])
        z = jax.nn.sigmoid(gi[:, H:2 * H] + gh[:, H:2 * H])
        n = jnp.tanh(gi[:, 2 * H:] + r * gh[:, 2 * H:])
        h = (1.0 - z) * n + z * h
        logits_all.append(h @ p["wo_t"] + p["bo"])
        attn_all.append(attn_w)
    return (jnp.stack(logits_all).reshape(-1, 1, 1, VOCAB),
            h.reshape(1, 1, HIDDEN),
            jnp.stack(attn_all).reshape(-1, 1, MAX_LEN))


if __name__ == "__main__":
    key = jax.random.PRNGKey(0)
    kp, kh, ke = jax.random.split(key, 3)

    params = init_params(kp)
    packs = pack_params(params)

    tokens = jnp.array([3, 7, 0, 63, 12, 41, 5, 30], dtype=jnp.int32)              # T = 8 decode steps
    hidden = jax.random.normal(kh, (1, 1, HIDDEN), jnp.float32) * 0.1              # (1,1,H)
    encoder_outputs = jax.random.normal(ke, (MAX_LEN, HIDDEN), jnp.float32) * 0.1  # (L,H)

    out, hid, attn_w = attention_decoder_decode(tokens, hidden, encoder_outputs, packs)
    jax.block_until_ready((out, hid, attn_w))

    out_r, hid_r, attn_r = reference_decode(tokens, hidden, encoder_outputs, params)
    # The approximate reciprocal was removed (exact softmax division).  The remaining
    # tolerance budget only covers default-precision MXU input rounding (present in
    # both the kernel and the XLA reference) and the documented reassociations
    # (enc@Wc_a hoist, batched emb fold), compounded over 8 chained GRU steps.
    assert jnp.allclose(out, out_r, atol=1e-3, rtol=1e-3), float(jnp.max(jnp.abs(out - out_r)))
    assert jnp.allclose(hid, hid_r, atol=1e-3, rtol=1e-3), float(jnp.max(jnp.abs(hid - hid_r)))
    assert jnp.allclose(attn_w, attn_r, atol=1e-3, rtol=1e-3), float(jnp.max(jnp.abs(attn_w - attn_r)))

    print("KERNEL_OK")
</pallas_src>

<mosaic_0001>
module attributes {stable_mosaic.version = 11 : i64} {
  func.func @attn_decoder_kernel(%arg0: memref<8xi32, #tpu.memory_space<smem>>, %arg1: memref<1x32xf32, #tpu.memory_space<vmem>>, %arg2: memref<16x32xf32, #tpu.memory_space<vmem>>, %arg3: memref<64x32xf32, #tpu.memory_space<vmem>>, %arg4: memref<160x128xf32, #tpu.memory_space<vmem>>, %arg5: memref<8x128xf32, #tpu.memory_space<vmem>>, %arg6: memref<8x128xf32, #tpu.memory_space<vmem>>, %arg7: memref<64x128xf32, #tpu.memory_space<vmem>>) attributes {dimension_semantics = [], scalar_prefetch = 0 : i64, scratch_operands = 1 : i64, tpu.core_type = #tpu.core_type<tc>} {
    %c0 = arith.constant 0 : index
    %c0_0 = arith.constant 0 : index
    %0 = vector.load %arg4[%c0, %c0_0] : memref<160x128xf32, #tpu.memory_space<vmem>>, vector<32x128xf32>
    %c32 = arith.constant 32 : index
    %c0_1 = arith.constant 0 : index
    %1 = vector.load %arg4[%c32, %c0_1] : memref<160x128xf32, #tpu.memory_space<vmem>>, vector<32x128xf32>
    %c64 = arith.constant 64 : index
    %c0_2 = arith.constant 0 : index
    %2 = vector.load %arg4[%c64, %c0_2] : memref<160x128xf32, #tpu.memory_space<vmem>>, vector<32x128xf32>
    %c1 = arith.constant 1 : index
    %c0_3 = arith.constant 0 : index
    %3 = vector.load %arg5[%c1, %c0_3] : memref<8x128xf32, #tpu.memory_space<vmem>>, vector<1x128xf32>
    %c2 = arith.constant 2 : index
    %c0_4 = arith.constant 0 : index
    %4 = vector.load %arg5[%c2, %c0_4] : memref<8x128xf32, #tpu.memory_space<vmem>>, vector<1x128xf32>
    %c3 = arith.constant 3 : index
    %c0_5 = arith.constant 0 : index
    %5 = vector.load %arg5[%c3, %c0_5] : memref<8x128xf32, #tpu.memory_space<vmem>>, vector<1x128xf32>
    %c0_6 = arith.constant 0 : index
    %c0_7 = arith.constant 0 : index
    %6 = vector.load %arg3[%c0_6, %c0_7] : memref<64x32xf32, #tpu.memory_space<vmem>>, vector<64x32xf32>
    %c96 = arith.constant 96 : index
    %c0_8 = arith.constant 0 : index
    %7 = vector.load %arg4[%c96, %c0_8] : memref<160x128xf32, #tpu.memory_space<vmem>>, vector<32x128xf32>
    %cst = arith.constant dense<0.000000e+00> : vector<64x128xf32>
    %8 = tpu.matmul %6, %7, %cst {dimension_numbers = #tpu.dot_dimension_numbers<[1], [0], [0], [1], [0, 0, 1, 1], [], []>} : vector<64x32xf32>, vector<32x128xf32>, vector<64x128xf32> -> vector<64x128xf32>
    %c0_9 = arith.constant 0 : index
    %c0_10 = arith.constant 0 : index
    %9 = vector.load %arg5[%c0_9, %c0_10] : memref<8x128xf32, #tpu.memory_space<vmem>>, vector<1x128xf32>
    %10 = vector.broadcast %9 : vector<1x128xf32> to vector<64x128xf32>
    %11 = arith.addf %8, %10 : vector<64x128xf32>
    %c0_11 = arith.constant 0 : index
    %c0_12 = arith.constant 0 : index
    %12 = vector.load %arg7[%c0_11, %c0_12] : memref<64x128xf32, #tpu.memory_space<vmem>>, vector<64x128xf32>
    tpu.vector_store %arg7[%c0_11, %c0_12], %11 {strides = array<i32>} : memref<64x128xf32, #tpu.memory_space<vmem>>, vector<64x128xf32>,
    %c0_13 = arith.constant 0 : index
    %c0_14 = arith.constant 0 : index
    %13 = vector.load %arg2[%c0_13, %c0_14] : memref<16x32xf32, #tpu.memory_space<vmem>>, vector<16x32xf32>
    %c128 = arith.constant 128 : index
    %c0_15 = arith.constant 0 : index
    %14 = vector.load %arg4[%c128, %c0_15] : memref<160x128xf32, #tpu.memory_space<vmem>>, vector<32x128xf32>
    %cst_16 = arith.constant dense<0.000000e+00> : vector<16x128xf32>
    %15 = tpu.matmul %13, %14, %cst_16 {dimension_numbers = #tpu.dot_dimension_numbers<[1], [0], [0], [1], [0, 0, 1, 1], [], []>} : vector<16x32xf32>, vector<32x128xf32>, vector<16x128xf32> -> vector<16x128xf32>
    %c0_17 = arith.constant 0 : index
    %16 = memref.load %arg0[%c0_17] : memref<8xi32, #tpu.memory_space<smem>>
    %c0_i32 = arith.constant 0 : i32
    %c63_i32 = arith.constant 63 : i32
    %17 = arith.maxsi %c0_i32, %16 : i32
    %18 = arith.minsi %c63_i32, %17 : i32
    %19 = arith.index_cast %18 : i32 to index
    %c0_18 = arith.constant 0 : index
    %20 = vector.load %arg7[%19, %c0_18] : memref<64x128xf32, #tpu.memory_space<vmem>>, vector<1x128xf32>
    %c1_19 = arith.constant 1 : index
    %21 = memref.load %arg0[%c1_19] : memref<8xi32, #tpu.memory_space<smem>>
    %c0_i32_20 = arith.constant 0 : i32
    %c63_i32_21 = arith.constant 63 : i32
    %22 = arith.maxsi %c0_i32_20, %21 : i32
    %23 = arith.minsi %c63_i32_21, %22 : i32
    %24 = arith.index_cast %23 : i32 to index
    %c0_22 = arith.constant 0 : index
    %25 = vector.load %arg7[%24, %c0_22] : memref<64x128xf32, #tpu.memory_space<vmem>>, vector<1x128xf32>
    %c2_23 = arith.constant 2 : index
    %26 = memref.load %arg0[%c2_23] : memref<8xi32, #tpu.memory_space<smem>>
    %c0_i32_24 = arith.constant 0 : i32
    %c63_i32_25 = arith.constant 63 : i32
    %27 = arith.maxsi %c0_i32_24, %26 : i32
    %28 = arith.minsi %c63_i32_25, %27 : i32
    %29 = arith.index_cast %28 : i32 to index
    %c0_26 = arith.constant 0 : index
    %30 = vector.load %arg7[%29, %c0_26] : memref<64x128xf32, #tpu.memory_space<vmem>>, vector<1x128xf32>
    %c3_27 = arith.constant 3 : index
    %31 = memref.load %arg0[%c3_27] : memref<8xi32, #tpu.memory_space<smem>>
    %c0_i32_28 = arith.constant 0 : i32
    %c63_i32_29 = arith.constant 63 : i32
    %32 = arith.maxsi %c0_i32_28, %31 : i32
    %33 = arith.minsi %c63_i32_29, %32 : i32
    %34 = arith.index_cast %33 : i32 to index
    %c0_30 = arith.constant 0 : index
    %35 = vector.load %arg7[%34, %c0_30] : memref<64x128xf32, #tpu.memory_space<vmem>>, vector<1x128xf32>
    %c4 = arith.constant 4 : index
    %36 = memref.load %arg0[%c4] : memref<8xi32, #tpu.memory_space<smem>>
    %c0_i32_31 = arith.constant 0 : i32
    %c63_i32_32 = arith.constant 63 : i32
    %37 = arith.maxsi %c0_i32_31, %36 : i32
    %38 = arith.minsi %c63_i32_32, %37 : i32
    %39 = arith.index_cast %38 : i32 to index
    %c0_33 = arith.constant 0 : index
    %40 = vector.load %arg7[%39, %c0_33] : memref<64x128xf32, #tpu.memory_space<vmem>>, vector<1x128xf32>
    %c5 = arith.constant 5 : index
    %41 = memref.load %arg0[%c5] : memref<8xi32, #tpu.memory_space<smem>>
    %c0_i32_34 = arith.constant 0 : i32
    %c63_i32_35 = arith.constant 63 : i32
    %42 = arith.maxsi %c0_i32_34, %41 : i32
    %43 = arith.minsi %c63_i32_35, %42 : i32
    %44 = arith.index_cast %43 : i32 to index
    %c0_36 = arith.constant 0 : index
    %45 = vector.load %arg7[%44, %c0_36] : memref<64x128xf32, #tpu.memory_space<vmem>>, vector<1x128xf32>
    %c6 = arith.constant 6 : index
    %46 = memref.load %arg0[%c6] : memref<8xi32, #tpu.memory_space<smem>>
    %c0_i32_37 = arith.constant 0 : i32
    %c63_i32_38 = arith.constant 63 : i32
    %47 = arith.maxsi %c0_i32_37, %46 : i32
    %48 = arith.minsi %c63_i32_38, %47 : i32
    %49 = arith.index_cast %48 : i32 to index
    %c0_39 = arith.constant 0 : index
    %50 = vector.load %arg7[%49, %c0_39] : memref<64x128xf32, #tpu.memory_space<vmem>>, vector<1x128xf32>
    %c7 = arith.constant 7 : index
    %51 = memref.load %arg0[%c7] : memref<8xi32, #tpu.memory_space<smem>>
    %c0_i32_40 = arith.constant 0 : i32
    %c63_i32_41 = arith.constant 63 : i32
    %52 = arith.maxsi %c0_i32_40, %51 : i32
    %53 = arith.minsi %c63_i32_41, %52 : i32
    %54 = arith.index_cast %53 : i32 to index
    %c0_42 = arith.constant 0 : index
    %55 = vector.load %arg7[%54, %c0_42] : memref<64x128xf32, #tpu.memory_space<vmem>>, vector<1x128xf32>
    %c0_43 = arith.constant 0 : index
    %c0_44 = arith.constant 0 : index
    %56 = vector.load %arg1[%c0_43, %c0_44] : memref<1x32xf32, #tpu.memory_space<vmem>>, vector<1x32xf32>
    %cst_45 = arith.constant dense<0.000000e+00> : vector<1x128xf32>
    %57 = tpu.matmul %56, %0, %cst_45 {dimension_numbers = #tpu.dot_dimension_numbers<[1], [0], [0], [1], [0, 0, 1, 1], [], []>} : vector<1x32xf32>, vector<32x128xf32>, vector<1x128xf32> -> vector<1x128xf32>
    %58 = arith.addf %57, %3 : vector<1x128xf32>
    %59 = vector.extract_strided_slice %20 {offsets = [0, 96], sizes = [1, 16], strides = [1, 1]} : vector<1x128xf32> to vector<1x16xf32>
    %60 = vector.extract_strided_slice %58 {offsets = [0, 96], sizes = [1, 16], strides = [1, 1]} : vector<1x128xf32> to vector<1x16xf32>
    %61 = arith.addf %59, %60 : vector<1x16xf32>
    %cst_46 = arith.constant dense<0xFF800000> : vector<1xf32>
    %62 = vector.multi_reduction <maximumf>, %61, %cst_46 [1] : vector<1x16xf32> to vector<1xf32>
    %63 = vector.shape_cast %62 : vector<1xf32> to vector<1x1xf32>
    %64 = vector.broadcast %63 : vector<1x1xf32> to vector<1x16xf32>
    %65 = arith.subf %61, %64 : vector<1x16xf32>
    %66 = math.exp %65 : vector<1x16xf32>
    %cst_47 = arith.constant dense<0.000000e+00> : vector<1xf32>
    %67 = vector.multi_reduction <add>, %66, %cst_47 [1] : vector<1x16xf32> to vector<1xf32>
    %68 = vector.shape_cast %67 : vector<1xf32> to vector<1x1xf32>
    %69 = vector.broadcast %68 : vector<1x1xf32> to vector<1x16xf32>
    %70 = arith.divf %66, %69 : vector<1x16xf32>
    %cst_48 = arith.constant dense<0.000000e+00> : vector<1x128xf32>
    %71 = tpu.matmul %70, %15, %cst_48 {dimension_numbers = #tpu.dot_dimension_numbers<[1], [0], [0], [1], [0, 0, 1, 1], [], []>} : vector<1x16xf32>, vector<16x128xf32>, vector<1x128xf32> -> vector<1x128xf32>
    %72 = vector.extract_strided_slice %20 {offsets = [0, 0], sizes = [1, 32], strides = [1, 1]} : vector<1x128xf32> to vector<1x32xf32>
    %73 = vector.extract_strided_slice %71 {offsets = [0, 0], sizes = [1, 32], strides = [1, 1]} : vector<1x128xf32> to vector<1x32xf32>
    %74 = arith.addf %72, %73 : vector<1x32xf32>
    %cst_49 = arith.constant dense<0.000000e+00> : vector<1x128xf32>
    %75 = tpu.matmul %74, %1, %cst_49 {dimension_numbers = #tpu.dot_dimension_numbers<[1], [0], [0], [1], [0, 0, 1, 1], [], []>} : vector<1x32xf32>, vector<32x128xf32>, vector<1x128xf32> -> vector<1x128xf32>
    %76 = arith.addf %75, %4 : vector<1x128xf32>
    %77 = arith.addf %76, %58 : vector<1x128xf32>
    %78 = vector.extract_strided_slice %77 {offsets = [0, 0], sizes = [1, 64], strides = [1, 1]} : vector<1x128xf32> to vector<1x64xf32>
    %79 = arith.negf %78 : vector<1x64xf32>
    %80 = math.exp %79 : vector<1x64xf32>
    %cst_50 = arith.constant 1.000000e+00 : f32
    %81 = vector.broadcast %cst_50 : f32 to vector<1x64xf32>
    %82 = arith.addf %81, %80 : vector<1x64xf32>
    %83 = arith.divf %81, %82 : vector<1x64xf32>
    %84 = vector.extract_strided_slice %83 {offsets = [0, 0], sizes = [1, 32], strides = [1, 1]} : vector<1x64xf32> to vector<1x32xf32>
    %85 = vector.extract_strided_slice %83 {offsets = [0, 32], sizes = [1, 32], strides = [1, 1]} : vector<1x64xf32> to vector<1x32xf32>
    %86 = vector.extract_strided_slice %76 {offsets = [0, 64], sizes = [1, 32], strides = [1, 1]} : vector<1x128xf32> to vector<1x32xf32>
    %87 = vector.extract_strided_slice %58 {offsets = [0, 64], sizes = [1, 32], strides = [1, 1]} : vector<1x128xf32> to vector<1x32xf32>
    %88 = arith.mulf %84, %87 : vector<1x32xf32>
    %89 = arith.addf %86, %88 : vector<1x32xf32>
    %90 = math.tanh %89 : vector<1x32xf32>
    %cst_51 = arith.constant 1.000000e+00 : f32
    %91 = vector.broadcast %cst_51 : f32 to vector<1x32xf32>
    %92 = arith.subf %91, %85 : vector<1x32xf32>
    %93 = arith.mulf %92, %90 : vector<1x32xf32>
    %94 = arith.mulf %85, %56 : vector<1x32xf32>
    %95 = arith.addf %93, %94 : vector<1x32xf32>
    %cst_52 = arith.constant dense<0.000000e+00> : vector<1x128xf32>
    %96 = tpu.matmul %95, %2, %cst_52 {dimension_numbers = #tpu.dot_dimension_numbers<[1], [0], [0], [1], [0, 0, 1, 1], [], []>} : vector<1x32xf32>, vector<32x128xf32>, vector<1x128xf32> -> vector<1x128xf32>
    %97 = arith.addf %96, %5 : vector<1x128xf32>
    %c0_53 = arith.constant 0 : index
    %c0_54 = arith.constant 0 : index
    %98 = vector.load %arg6[%c0_53, %c0_54] : memref<8x128xf32, #tpu.memory_space<vmem>>, vector<1x128xf32>
    tpu.vector_store %arg6[%c0_53, %c0_54], %97 {strides = array<i32>} : memref<8x128xf32, #tpu.memory_space<vmem>>, vector<1x128xf32>,
    %c0_55 = arith.constant 0 : index
    %c96_56 = arith.constant 96 : index
    %99 = vector.load %arg6[%c0_55, %c96_56] : memref<8x128xf32, #tpu.memory_space<vmem>>, vector<1x16xf32>
    tpu.vector_store %arg6[%c0_55, %c96_56], %70 {strides = array<i32>} : memref<8x128xf32, #tpu.memory_space<vmem>>, vector<1x16xf32>,
    %cst_57 = arith.constant dense<0.000000e+00> : vector<1x128xf32>
    %100 = tpu.matmul %95, %0, %cst_57 {dimension_numbers = #tpu.dot_dimension_numbers<[1], [0], [0], [1], [0, 0, 1, 1], [], []>} : vector<1x32xf32>, vector<32x128xf32>, vector<1x128xf32> -> vector<1x128xf32>
    %101 = arith.addf %100, %3 : vector<1x128xf32>
    %102 = vector.extract_strided_slice %25 {offsets = [0, 96], sizes = [1, 16], strides = [1, 1]} : vector<1x128xf32> to vector<1x16xf32>
    %103 = vector.extract_strided_slice %101 {offsets = [0, 96], sizes = [1, 16], strides = [1, 1]} : vector<1x128xf32> to vector<1x16xf32>
    %104 = arith.addf %102, %103 : vector<1x16xf32>
    %cst_58 = arith.constant dense<0xFF800000> : vector<1xf32>
    %105 = vector.multi_reduction <maximumf>, %104, %cst_58 [1] : vector<1x16xf32> to vector<1xf32>
    %106 = vector.shape_cast %105 : vector<1xf32> to vector<1x1xf32>
    %107 = vector.broadcast %106 : vector<1x1xf32> to vector<1x16xf32>
    %108 = arith.subf %104, %107 : vector<1x16xf32>
    %109 = math.exp %108 : vector<1x16xf32>
    %cst_59 = arith.constant dense<0.000000e+00> : vector<1xf32>
    %110 = vector.multi_reduction <add>, %109, %cst_59 [1] : vector<1x16xf32> to vector<1xf32>
    %111 = vector.shape_cast %110 : vector<1xf32> to vector<1x1xf32>
    %112 = vector.broadcast %111 : vector<1x1xf32> to vector<1x16xf32>
    %113 = arith.divf %109, %112 : vector<1x16xf32>
    %cst_60 = arith.constant dense<0.000000e+00> : vector<1x128xf32>
    %114 = tpu.matmul %113, %15, %cst_60 {dimension_numbers = #tpu.dot_dimension_numbers<[1], [0], [0], [1], [0, 0, 1, 1], [], []>} : vector<1x16xf32>, vector<16x128xf32>, vector<1x128xf32> -> vector<1x128xf32>
    %115 = vector.extract_strided_slice %25 {offsets = [0, 0], sizes = [1, 32], strides = [1, 1]} : vector<1x128xf32> to vector<1x32xf32>
    %116 = vector.extract_strided_slice %114 {offsets = [0, 0], sizes = [1, 32], strides = [1, 1]} : vector<1x128xf32> to vector<1x32xf32>
    %117 = arith.addf %115, %116 : vector<1x32xf32>
    %cst_61 = arith.constant dense<0.000000e+00> : vector<1x128xf32>
    %118 = tpu.matmul %117, %1, %cst_61 {dimension_numbers = #tpu.dot_dimension_numbers<[1], [0], [0], [1], [0, 0, 1, 1], [], []>} : vector<1x32xf32>, vector<32x128xf32>, vector<1x128xf32> -> vector<1x128xf32>
    %119 = arith.addf %118, %4 : vector<1x128xf32>
    %120 = arith.addf %119, %101 : vector<1x128xf32>
    %121 = vector.extract_strided_slice %120 {offsets = [0, 0], sizes = [1, 64], strides = [1, 1]} : vector<1x128xf32> to vector<1x64xf32>
    %122 = arith.negf %121 : vector<1x64xf32>
    %123 = math.exp %122 : vector<1x64xf32>
    %cst_62 = arith.constant 1.000000e+00 : f32
    %124 = vector.broadcast %cst_62 : f32 to vector<1x64xf32>
    %125 = arith.addf %124, %123 : vector<1x64xf32>
    %126 = arith.divf %124, %125 : vector<1x64xf32>
    %127 = vector.extract_strided_slice %126 {offsets = [0, 0], sizes = [1, 32], strides = [1, 1]} : vector<1x64xf32> to vector<1x32xf32>
    %128 = vector.extract_strided_slice %126 {offsets = [0, 32], sizes = [1, 32], strides = [1, 1]} : vector<1x64xf32> to vector<1x32xf32>
    %129 = vector.extract_strided_slice %119 {offsets = [0, 64], sizes = [1, 32], strides = [1, 1]} : vector<1x128xf32> to vector<1x32xf32>
    %130 = vector.extract_strided_slice %101 {offsets = [0, 64], sizes = [1, 32], strides = [1, 1]} : vector<1x128xf32> to vector<1x32xf32>
    %131 = arith.mulf %127, %130 : vector<1x32xf32>
    %132 = arith.addf %129, %131 : vector<1x32xf32>
    %133 = math.tanh %132 : vector<1x32xf32>
    %cst_63 = arith.constant 1.000000e+00 : f32
    %134 = vector.broadcast %cst_63 : f32 to vector<1x32xf32>
    %135 = arith.subf %134, %128 : vector<1x32xf32>
    %136 = arith.mulf %135, %133 : vector<1x32xf32>
    %137 = arith.mulf %128, %95 : vector<1x32xf32>
    %138 = arith.addf %136, %137 : vector<1x32xf32>
    %cst_64 = arith.constant dense<0.000000e+00> : vector<1x128xf32>
    %139 = tpu.matmul %138, %2, %cst_64 {dimension_numbers = #tpu.dot_dimension_numbers<[1], [0], [0], [1], [0, 0, 1, 1], [], []>} : vector<1x32xf32>, vector<32x128xf32>, vector<1x128xf32> -> vector<1x128xf32>
    %140 = arith.addf %139, %5 : vector<1x128xf32>
    %c1_65 = arith.constant 1 : index
    %c0_66 = arith.constant 0 : index
    %141 = vector.load %arg6[%c1_65, %c0_66] : memref<8x128xf32, #tpu.memory_space<vmem>>, vector<1x128xf32>
    tpu.vector_store %arg6[%c1_65, %c0_66], %140 {strides = array<i32>} : memref<8x128xf32, #tpu.memory_space<vmem>>, vector<1x128xf32>,
    %c1_67 = arith.constant 1 : index
    %c96_68 = arith.constant 96 : index
    %142 = vector.load %arg6[%c1_67, %c96_68] : memref<8x128xf32, #tpu.memory_space<vmem>>, vector<1x16xf32>
    tpu.vector_store %arg6[%c1_67, %c96_68], %113 {strides = array<i32>} : memref<8x128xf32, #tpu.memory_space<vmem>>, vector<1x16xf32>,
    %cst_69 = arith.constant dense<0.000000e+00> : vector<1x128xf32>
    %143 = tpu.matmul %138, %0, %cst_69 {dimension_numbers = #tpu.dot_dimension_numbers<[1], [0], [0], [1], [0, 0, 1, 1], [], []>} : vector<1x32xf32>, vector<32x128xf32>, vector<1x128xf32> -> vector<1x128xf32>
    %144 = arith.addf %143, %3 : vector<1x128xf32>
    %145 = vector.extract_strided_slice %30 {offsets = [0, 96], sizes = [1, 16], strides = [1, 1]} : vector<1x128xf32> to vector<1x16xf32>
    %146 = vector.extract_strided_slice %144 {offsets = [0, 96], sizes = [1, 16], strides = [1, 1]} : vector<1x128xf32> to vector<1x16xf32>
    %147 = arith.addf %145, %146 : vector<1x16xf32>
    %cst_70 = arith.constant dense<0xFF800000> : vector<1xf32>
    %148 = vector.multi_reduction <maximumf>, %147, %cst_70 [1] : vector<1x16xf32> to vector<1xf32>
    %149 = vector.shape_cast %148 : vector<1xf32> to vector<1x1xf32>
    %150 = vector.broadcast %149 : vector<1x1xf32> to vector<1x16xf32>
    %151 = arith.subf %147, %150 : vector<1x16xf32>
    %152 = math.exp %151 : vector<1x16xf32>
    %cst_71 = arith.constant dense<0.000000e+00> : vector<1xf32>
    %153 = vector.multi_reduction <add>, %152, %cst_71 [1] : vector<1x16xf32> to vector<1xf32>
    %154 = vector.shape_cast %153 : vector<1xf32> to vector<1x1xf32>
    %155 = vector.broadcast %154 : vector<1x1xf32> to vector<1x16xf32>
    %156 = arith.divf %152, %155 : vector<1x16xf32>
    %cst_72 = arith.constant dense<0.000000e+00> : vector<1x128xf32>
    %157 = tpu.matmul %156, %15, %cst_72 {dimension_numbers = #tpu.dot_dimension_numbers<[1], [0], [0], [1], [0, 0, 1, 1], [], []>} : vector<1x16xf32>, vector<16x128xf32>, vector<1x128xf32> -> vector<1x128xf32>
    %158 = vector.extract_strided_slice %30 {offsets = [0, 0], sizes = [1, 32], strides = [1, 1]} : vector<1x128xf32> to vector<1x32xf32>
    %159 = vector.extract_strided_slice %157 {offsets = [0, 0], sizes = [1, 32], strides = [1, 1]} : vector<1x128xf32> to vector<1x32xf32>
    %160 = arith.addf %158, %159 : vector<1x32xf32>
    %cst_73 = arith.constant dense<0.000000e+00> : vector<1x128xf32>
    %161 = tpu.matmul %160, %1, %cst_73 {dimension_numbers = #tpu.dot_dimension_numbers<[1], [0], [0], [1], [0, 0, 1, 1], [], []>} : vector<1x32xf32>, vector<32x128xf32>, vector<1x128xf32> -> vector<1x128xf32>
    %162 = arith.addf %161, %4 : vector<1x128xf32>
    %163 = arith.addf %162, %144 : vector<1x128xf32>
    %164 = vector.extract_strided_slice %163 {offsets = [0, 0], sizes = [1, 64], strides = [1, 1]} : vector<1x128xf32> to vector<1x64xf32>
    %165 = arith.negf %164 : vector<1x64xf32>
    %166 = math.exp %165 : vector<1x64xf32>
    %cst_74 = arith.constant 1.000000e+00 : f32
    %167 = vector.broadcast %cst_74 : f32 to vector<1x64xf32>
    %168 = arith.addf %167, %166 : vector<1x64xf32>
    %169 = arith.divf %167, %168 : vector<1x64xf32>
    %170 = vector.extract_strided_slice %169 {offsets = [0, 0], sizes = [1, 32], strides = [1, 1]} : vector<1x64xf32> to vector<1x32xf32>
    %171 = vector.extract_strided_slice %169 {offsets = [0, 32], sizes = [1, 32], strides = [1, 1]} : vector<1x64xf32> to vector<1x32xf32>
    %172 = vector.extract_strided_slice %162 {offsets = [0, 64], sizes = [1, 32], strides = [1, 1]} : vector<1x128xf32> to vector<1x32xf32>
    %173 = vector.extract_strided_slice %144 {offsets = [0, 64], sizes = [1, 32], strides = [1, 1]} : vector<1x128xf32> to vector<1x32xf32>
    %174 = arith.mulf %170, %173 : vector<1x32xf32>
    %175 = arith.addf %172, %174 : vector<1x32xf32>
    %176 = math.tanh %175 : vector<1x32xf32>
    %cst_75 = arith.constant 1.000000e+00 : f32
    %177 = vector.broadcast %cst_75 : f32 to vector<1x32xf32>
    %178 = arith.subf %177, %171 : vector<1x32xf32>
    %179 = arith.mulf %178, %176 : vector<1x32xf32>
    %180 = arith.mulf %171, %138 : vector<1x32xf32>
    %181 = arith.addf %179, %180 : vector<1x32xf32>
    %cst_76 = arith.constant dense<0.000000e+00> : vector<1x128xf32>
    %182 = tpu.matmul %181, %2, %cst_76 {dimension_numbers = #tpu.dot_dimension_numbers<[1], [0], [0], [1], [0, 0, 1, 1], [], []>} : vector<1x32xf32>, vector<32x128xf32>, vector<1x128xf32> -> vector<1x128xf32>
    %183 = arith.addf %182, %5 : vector<1x128xf32>
    %c2_77 = arith.constant 2 : index
    %c0_78 = arith.constant 0 : index
    %184 = vector.load %arg6[%c2_77, %c0_78] : memref<8x128xf32, #tpu.memory_space<vmem>>, vector<1x128xf32>
    tpu.vector_store %arg6[%c2_77, %c0_78], %183 {strides = array<i32>} : memref<8x128xf32, #tpu.memory_space<vmem>>, vector<1x128xf32>,
    %c2_79 = arith.constant 2 : index
    %c96_80 = arith.constant 96 : index
    %185 = vector.load %arg6[%c2_79, %c96_80] : memref<8x128xf32, #tpu.memory_space<vmem>>, vector<1x16xf32>
    tpu.vector_store %arg6[%c2_79, %c96_80], %156 {strides = array<i32>} : memref<8x128xf32, #tpu.memory_space<vmem>>, vector<1x16xf32>,
    %cst_81 = arith.constant dense<0.000000e+00> : vector<1x128xf32>
    %186 = tpu.matmul %181, %0, %cst_81 {dimension_numbers = #tpu.dot_dimension_numbers<[1], [0], [0], [1], [0, 0, 1, 1], [], []>} : vector<1x32xf32>, vector<32x128xf32>, vector<1x128xf32> -> vector<1x128xf32>
    %187 = arith.addf %186, %3 : vector<1x128xf32>
    %188 = vector.extract_strided_slice %35 {offsets = [0, 96], sizes = [1, 16], strides = [1, 1]} : vector<1x128xf32> to vector<1x16xf32>
    %189 = vector.extract_strided_slice %187 {offsets = [0, 96], sizes = [1, 16], strides = [1, 1]} : vector<1x128xf32> to vector<1x16xf32>
    %190 = arith.addf %188, %189 : vector<1x16xf32>
    %cst_82 = arith.constant dense<0xFF800000> : vector<1xf32>
    %191 = vector.multi_reduction <maximumf>, %190, %cst_82 [1] : vector<1x16xf32> to vector<1xf32>
    %192 = vector.shape_cast %191 : vector<1xf32> to vector<1x1xf32>
    %193 = vector.broadcast %192 : vector<1x1xf32> to vector<1x16xf32>
    %194 = arith.subf %190, %193 : vector<1x16xf32>
    %195 = math.exp %194 : vector<1x16xf32>
    %cst_83 = arith.constant dense<0.000000e+00> : vector<1xf32>
    %196 = vector.multi_reduction <add>, %195, %cst_83 [1] : vector<1x16xf32> to vector<1xf32>
    %197 = vector.shape_cast %196 : vector<1xf32> to vector<1x1xf32>
    %198 = vector.broadcast %197 : vector<1x1xf32> to vector<1x16xf32>
    %199 = arith.divf %195, %198 : vector<1x16xf32>
    %cst_84 = arith.constant dense<0.000000e+00> : vector<1x128xf32>
    %200 = tpu.matmul %199, %15, %cst_84 {dimension_numbers = #tpu.dot_dimension_numbers<[1], [0], [0], [1], [0, 0, 1, 1], [], []>} : vector<1x16xf32>, vector<16x128xf32>, vector<1x128xf32> -> vector<1x128xf32>
    %201 = vector.extract_strided_slice %35 {offsets = [0, 0], sizes = [1, 32], strides = [1, 1]} : vector<1x128xf32> to vector<1x32xf32>
    %202 = vector.extract_strided_slice %200 {offsets = [0, 0], sizes = [1, 32], strides = [1, 1]} : vector<1x128xf32> to vector<1x32xf32>
    %203 = arith.addf %201, %202 : vector<1x32xf32>
    %cst_85 = arith.constant dense<0.000000e+00> : vector<1x128xf32>
    %204 = tpu.matmul %203, %1, %cst_85 {dimension_numbers = #tpu.dot_dimension_numbers<[1], [0], [0], [1], [0, 0, 1, 1], [], []>} : vector<1x32xf32>, vector<32x128xf32>, vector<1x128xf32> -> vector<1x128xf32>
    %205 = arith.addf %204, %4 : vector<1x128xf32>
    %206 = arith.addf %205, %187 : vector<1x128xf32>
    %207 = vector.extract_strided_slice %206 {offsets = [0, 0], sizes = [1, 64], strides = [1, 1]} : vector<1x128xf32> to vector<1x64xf32>
    %208 = arith.negf %207 : vector<1x64xf32>
    %209 = math.exp %208 : vector<1x64xf32>
    %cst_86 = arith.constant 1.000000e+00 : f32
    %210 = vector.broadcast %cst_86 : f32 to vector<1x64xf32>
    %211 = arith.addf %210, %209 : vector<1x64xf32>
    %212 = arith.divf %210, %211 : vector<1x64xf32>
    %213 = vector.extract_strided_slice %212 {offsets = [0, 0], sizes = [1, 32], strides = [1, 1]} : vector<1x64xf32> to vector<1x32xf32>
    %214 = vector.extract_strided_slice %212 {offsets = [0, 32], sizes = [1, 32], strides = [1, 1]} : vector<1x64xf32> to vector<1x32xf32>
    %215 = vector.extract_strided_slice %205 {offsets = [0, 64], sizes = [1, 32], strides = [1, 1]} : vector<1x128xf32> to vector<1x32xf32>
    %216 = vector.extract_strided_slice %187 {offsets = [0, 64], sizes = [1, 32], strides = [1, 1]} : vector<1x128xf32> to vector<1x32xf32>
    %217 = arith.mulf %213, %216 : vector<1x32xf32>
    %218 = arith.addf %215, %217 : vector<1x32xf32>
    %219 = math.tanh %218 : vector<1x32xf32>
    %cst_87 = arith.constant 1.000000e+00 : f32
    %220 = vector.broadcast %cst_87 : f32 to vector<1x32xf32>
    %221 = arith.subf %220, %214 : vector<1x32xf32>
    %222 = arith.mulf %221, %219 : vector<1x32xf32>
    %223 = arith.mulf %214, %181 : vector<1x32xf32>
    %224 = arith.addf %222, %223 : vector<1x32xf32>
    %cst_88 = arith.constant dense<0.000000e+00> : vector<1x128xf32>
    %225 = tpu.matmul %224, %2, %cst_88 {dimension_numbers = #tpu.dot_dimension_numbers<[1], [0], [0], [1], [0, 0, 1, 1], [], []>} : vector<1x32xf32>, vector<32x128xf32>, vector<1x128xf32> -> vector<1x128xf32>
    %226 = arith.addf %225, %5 : vector<1x128xf32>
    %c3_89 = arith.constant 3 : index
    %c0_90 = arith.constant 0 : index
    %227 = vector.load %arg6[%c3_89, %c0_90] : memref<8x128xf32, #tpu.memory_space<vmem>>, vector<1x128xf32>
    tpu.vector_store %arg6[%c3_89, %c0_90], %226 {strides = array<i32>} : memref<8x128xf32, #tpu.memory_space<vmem>>, vector<1x128xf32>,
    %c3_91 = arith.constant 3 : index
    %c96_92 = arith.constant 96 : index
    %228 = vector.load %arg6[%c3_91, %c96_92] : memref<8x128xf32, #tpu.memory_space<vmem>>, vector<1x16xf32>
    tpu.vector_store %arg6[%c3_91, %c96_92], %199 {strides = array<i32>} : memref<8x128xf32, #tpu.memory_space<vmem>>, vector<1x16xf32>,
    %cst_93 = arith.constant dense<0.000000e+00> : vector<1x128xf32>
    %229 = tpu.matmul %224, %0, %cst_93 {dimension_numbers = #tpu.dot_dimension_numbers<[1], [0], [0], [1], [0, 0, 1, 1], [], []>} : vector<1x32xf32>, vector<32x128xf32>, vector<1x128xf32> -> vector<1x128xf32>
    %230 = arith.addf %229, %3 : vector<1x128xf32>
    %231 = vector.extract_strided_slice %40 {offsets = [0, 96], sizes = [1, 16], strides = [1, 1]} : vector<1x128xf32> to vector<1x16xf32>
    %232 = vector.extract_strided_slice %230 {offsets = [0, 96], sizes = [1, 16], strides = [1, 1]} : vector<1x128xf32> to vector<1x16xf32>
    %233 = arith.addf %231, %232 : vector<1x16xf32>
    %cst_94 = arith.constant dense<0xFF800000> : vector<1xf32>
    %234 = vector.multi_reduction <maximumf>, %233, %cst_94 [1] : vector<1x16xf32> to vector<1xf32>
    %235 = vector.shape_cast %234 : vector<1xf32> to vector<1x1xf32>
    %236 = vector.broadcast %235 : vector<1x1xf32> to vector<1x16xf32>
    %237 = arith.subf %233, %236 : vector<1x16xf32>
    %238 = math.exp %237 : vector<1x16xf32>
    %cst_95 = arith.constant dense<0.000000e+00> : vector<1xf32>
    %239 = vector.multi_reduction <add>, %238, %cst_95 [1] : vector<1x16xf32> to vector<1xf32>
    %240 = vector.shape_cast %239 : vector<1xf32> to vector<1x1xf32>
    %241 = vector.broadcast %240 : vector<1x1xf32> to vector<1x16xf32>
    %242 = arith.divf %238, %241 : vector<1x16xf32>
    %cst_96 = arith.constant dense<0.000000e+00> : vector<1x128xf32>
    %243 = tpu.matmul %242, %15, %cst_96 {dimension_numbers = #tpu.dot_dimension_numbers<[1], [0], [0], [1], [0, 0, 1, 1], [], []>} : vector<1x16xf32>, vector<16x128xf32>, vector<1x128xf32> -> vector<1x128xf32>
    %244 = vector.extract_strided_slice %40 {offsets = [0, 0], sizes = [1, 32], strides = [1, 1]} : vector<1x128xf32> to vector<1x32xf32>
    %245 = vector.extract_strided_slice %243 {offsets = [0, 0], sizes = [1, 32], strides = [1, 1]} : vector<1x128xf32> to vector<1x32xf32>
    %246 = arith.addf %244, %245 : vector<1x32xf32>
    %cst_97 = arith.constant dense<0.000000e+00> : vector<1x128xf32>
    %247 = tpu.matmul %246, %1, %cst_97 {dimension_numbers = #tpu.dot_dimension_numbers<[1], [0], [0], [1], [0, 0, 1, 1], [], []>} : vector<1x32xf32>, vector<32x128xf32>, vector<1x128xf32> -> vector<1x128xf32>
    %248 = arith.addf %247, %4 : vector<1x128xf32>
    %249 = arith.addf %248, %230 : vector<1x128xf32>
    %250 = vector.extract_strided_slice %249 {offsets = [0, 0], sizes = [1, 64], strides = [1, 1]} : vector<1x128xf32> to vector<1x64xf32>
    %251 = arith.negf %250 : vector<1x64xf32>
    %252 = math.exp %251 : vector<1x64xf32>
    %cst_98 = arith.constant 1.000000e+00 : f32
    %253 = vector.broadcast %cst_98 : f32 to vector<1x64xf32>
    %254 = arith.addf %253, %252 : vector<1x64xf32>
    %255 = arith.divf %253, %254 : vector<1x64xf32>
    %256 = vector.extract_strided_slice %255 {offsets = [0, 0], sizes = [1, 32], strides = [1, 1]} : vector<1x64xf32> to vector<1x32xf32>
    %257 = vector.extract_strided_slice %255 {offsets = [0, 32], sizes = [1, 32], strides = [1, 1]} : vector<1x64xf32> to vector<1x32xf32>
    %258 = vector.extract_strided_slice %248 {offsets = [0, 64], sizes = [1, 32], strides = [1, 1]} : vector<1x128xf32> to vector<1x32xf32>
    %259 = vector.extract_strided_slice %230 {offsets = [0, 64], sizes = [1, 32], strides = [1, 1]} : vector<1x128xf32> to vector<1x32xf32>
    %260 = arith.mulf %256, %259 : vector<1x32xf32>
    %261 = arith.addf %258, %260 : vector<1x32xf32>
    %262 = math.tanh %261 : vector<1x32xf32>
    %cst_99 = arith.constant 1.000000e+00 : f32
    %263 = vector.broadcast %cst_99 : f32 to vector<1x32xf32>
    %264 = arith.subf %263, %257 : vector<1x32xf32>
    %265 = arith.mulf %264, %262 : vector<1x32xf32>
    %266 = arith.mulf %257, %224 : vector<1x32xf32>
    %267 = arith.addf %265, %266 : vector<1x32xf32>
    %cst_100 = arith.constant dense<0.000000e+00> : vector<1x128xf32>
    %268 = tpu.matmul %267, %2, %cst_100 {dimension_numbers = #tpu.dot_dimension_numbers<[1], [0], [0], [1], [0, 0, 1, 1], [], []>} : vector<1x32xf32>, vector<32x128xf32>, vector<1x128xf32> -> vector<1x128xf32>
    %269 = arith.addf %268, %5 : vector<1x128xf32>
    %c4_101 = arith.constant 4 : index
    %c0_102 = arith.constant 0 : index
    %270 = vector.load %arg6[%c4_101, %c0_102] : memref<8x128xf32, #tpu.memory_space<vmem>>, vector<1x128xf32>
    tpu.vector_store %arg6[%c4_101, %c0_102], %269 {strides = array<i32>} : memref<8x128xf32, #tpu.memory_space<vmem>>, vector<1x128xf32>,
    %c4_103 = arith.constant 4 : index
    %c96_104 = arith.constant 96 : index
    %271 = vector.load %arg6[%c4_103, %c96_104] : memref<8x128xf32, #tpu.memory_space<vmem>>, vector<1x16xf32>
    tpu.vector_store %arg6[%c4_103, %c96_104], %242 {strides = array<i32>} : memref<8x128xf32, #tpu.memory_space<vmem>>, vector<1x16xf32>,
    %cst_105 = arith.constant dense<0.000000e+00> : vector<1x128xf32>
    %272 = tpu.matmul %267, %0, %cst_105 {dimension_numbers = #tpu.dot_dimension_numbers<[1], [0], [0], [1], [0, 0, 1, 1], [], []>} : vector<1x32xf32>, vector<32x128xf32>, vector<1x128xf32> -> vector<1x128xf32>
    %273 = arith.addf %272, %3 : vector<1x128xf32>
    %274 = vector.extract_strided_slice %45 {offsets = [0, 96], sizes = [1, 16], strides = [1, 1]} : vector<1x128xf32> to vector<1x16xf32>
    %275 = vector.extract_strided_slice %273 {offsets = [0, 96], sizes = [1, 16], strides = [1, 1]} : vector<1x128xf32> to vector<1x16xf32>
    %276 = arith.addf %274, %275 : vector<1x16xf32>
    %cst_106 = arith.constant dense<0xFF800000> : vector<1xf32>
    %277 = vector.multi_reduction <maximumf>, %276, %cst_106 [1] : vector<1x16xf32> to vector<1xf32>
    %278 = vector.shape_cast %277 : vector<1xf32> to vector<1x1xf32>
    %279 = vector.broadcast %278 : vector<1x1xf32> to vector<1x16xf32>
    %280 = arith.subf %276, %279 : vector<1x16xf32>
    %281 = math.exp %280 : vector<1x16xf32>
    %cst_107 = arith.constant dense<0.000000e+00> : vector<1xf32>
    %282 = vector.multi_reduction <add>, %281, %cst_107 [1] : vector<1x16xf32> to vector<1xf32>
    %283 = vector.shape_cast %282 : vector<1xf32> to vector<1x1xf32>
    %284 = vector.broadcast %283 : vector<1x1xf32> to vector<1x16xf32>
    %285 = arith.divf %281, %284 : vector<1x16xf32>
    %cst_108 = arith.constant dense<0.000000e+00> : vector<1x128xf32>
    %286 = tpu.matmul %285, %15, %cst_108 {dimension_numbers = #tpu.dot_dimension_numbers<[1], [0], [0], [1], [0, 0, 1, 1], [], []>} : vector<1x16xf32>, vector<16x128xf32>, vector<1x128xf32> -> vector<1x128xf32>
    %287 = vector.extract_strided_slice %45 {offsets = [0, 0], sizes = [1, 32], strides = [1, 1]} : vector<1x128xf32> to vector<1x32xf32>
    %288 = vector.extract_strided_slice %286 {offsets = [0, 0], sizes = [1, 32], strides = [1, 1]} : vector<1x128xf32> to vector<1x32xf32>
    %289 = arith.addf %287, %288 : vector<1x32xf32>
    %cst_109 = arith.constant dense<0.000000e+00> : vector<1x128xf32>
    %290 = tpu.matmul %289, %1, %cst_109 {dimension_numbers = #tpu.dot_dimension_numbers<[1], [0], [0], [1], [0, 0, 1, 1], [], []>} : vector<1x32xf32>, vector<32x128xf32>, vector<1x128xf32> -> vector<1x128xf32>
    %291 = arith.addf %290, %4 : vector<1x128xf32>
    %292 = arith.addf %291, %273 : vector<1x128xf32>
    %293 = vector.extract_strided_slice %292 {offsets = [0, 0], sizes = [1, 64], strides = [1, 1]} : vector<1x128xf32> to vector<1x64xf32>
    %294 = arith.negf %293 : vector<1x64xf32>
    %295 = math.exp %294 : vector<1x64xf32>
    %cst_110 = arith.constant 1.000000e+00 : f32
    %296 = vector.broadcast %cst_110 : f32 to vector<1x64xf32>
    %297 = arith.addf %296, %295 : vector<1x64xf32>
    %298 = arith.divf %296, %297 : vector<1x64xf32>
    %299 = vector.extract_strided_slice %298 {offsets = [0, 0], sizes = [1, 32], strides = [1, 1]} : vector<1x64xf32> to vector<1x32xf32>
    %300 = vector.extract_strided_slice %298 {offsets = [0, 32], sizes = [1, 32], strides = [1, 1]} : vector<1x64xf32> to vector<1x32xf32>
    %301 = vector.extract_strided_slice %291 {offsets = [0, 64], sizes = [1, 32], strides = [1, 1]} : vector<1x128xf32> to vector<1x32xf32>
    %302 = vector.extract_strided_slice %273 {offsets = [0, 64], sizes = [1, 32], strides = [1, 1]} : vector<1x128xf32> to vector<1x32xf32>
    %303 = arith.mulf %299, %302 : vector<1x32xf32>
    %304 = arith.addf %301, %303 : vector<1x32xf32>
    %305 = math.tanh %304 : vector<1x32xf32>
    %cst_111 = arith.constant 1.000000e+00 : f32
    %306 = vector.broadcast %cst_111 : f32 to vector<1x32xf32>
    %307 = arith.subf %306, %300 : vector<1x32xf32>
    %308 = arith.mulf %307, %305 : vector<1x32xf32>
    %309 = arith.mulf %300, %267 : vector<1x32xf32>
    %310 = arith.addf %308, %309 : vector<1x32xf32>
    %cst_112 = arith.constant dense<0.000000e+00> : vector<1x128xf32>
    %311 = tpu.matmul %310, %2, %cst_112 {dimension_numbers = #tpu.dot_dimension_numbers<[1], [0], [0], [1], [0, 0, 1, 1], [], []>} : vector<1x32xf32>, vector<32x128xf32>, vector<1x128xf32> -> vector<1x128xf32>
    %312 = arith.addf %311, %5 : vector<1x128xf32>
    %c5_113 = arith.constant 5 : index
    %c0_114 = arith.constant 0 : index
    %313 = vector.load %arg6[%c5_113, %c0_114] : memref<8x128xf32, #tpu.memory_space<vmem>>, vector<1x128xf32>
    tpu.vector_store %arg6[%c5_113, %c0_114], %312 {strides = array<i32>} : memref<8x128xf32, #tpu.memory_space<vmem>>, vector<1x128xf32>,
    %c5_115 = arith.constant 5 : index
    %c96_116 = arith.constant 96 : index
    %314 = vector.load %arg6[%c5_115, %c96_116] : memref<8x128xf32, #tpu.memory_space<vmem>>, vector<1x16xf32>
    tpu.vector_store %arg6[%c5_115, %c96_116], %285 {strides = array<i32>} : memref<8x128xf32, #tpu.memory_space<vmem>>, vector<1x16xf32>,
    %cst_117 = arith.constant dense<0.000000e+00> : vector<1x128xf32>
    %315 = tpu.matmul %310, %0, %cst_117 {dimension_numbers = #tpu.dot_dimension_numbers<[1], [0], [0], [1], [0, 0, 1, 1], [], []>} : vector<1x32xf32>, vector<32x128xf32>, vector<1x128xf32> -> vector<1x128xf32>
    %316 = arith.addf %315, %3 : vector<1x128xf32>
    %317 = vector.extract_strided_slice %50 {offsets = [0, 96], sizes = [1, 16], strides = [1, 1]} : vector<1x128xf32> to vector<1x16xf32>
    %318 = vector.extract_strided_slice %316 {offsets = [0, 96], sizes = [1, 16], strides = [1, 1]} : vector<1x128xf32> to vector<1x16xf32>
    %319 = arith.addf %317, %318 : vector<1x16xf32>
    %cst_118 = arith.constant dense<0xFF800000> : vector<1xf32>
    %320 = vector.multi_reduction <maximumf>, %319, %cst_118 [1] : vector<1x16xf32> to vector<1xf32>
    %321 = vector.shape_cast %320 : vector<1xf32> to vector<1x1xf32>
    %322 = vector.broadcast %321 : vector<1x1xf32> to vector<1x16xf32>
    %323 = arith.subf %319, %322 : vector<1x16xf32>
    %324 = math.exp %323 : vector<1x16xf32>
    %cst_119 = arith.constant dense<0.000000e+00> : vector<1xf32>
    %325 = vector.multi_reduction <add>, %324, %cst_119 [1] : vector<1x16xf32> to vector<1xf32>
    %326 = vector.shape_cast %325 : vector<1xf32> to vector<1x1xf32>
    %327 = vector.broadcast %326 : vector<1x1xf32> to vector<1x16xf32>
    %328 = arith.divf %324, %327 : vector<1x16xf32>
    %cst_120 = arith.constant dense<0.000000e+00> : vector<1x128xf32>
    %329 = tpu.matmul %328, %15, %cst_120 {dimension_numbers = #tpu.dot_dimension_numbers<[1], [0], [0], [1], [0, 0, 1, 1], [], []>} : vector<1x16xf32>, vector<16x128xf32>, vector<1x128xf32> -> vector<1x128xf32>
    %330 = vector.extract_strided_slice %50 {offsets = [0, 0], sizes = [1, 32], strides = [1, 1]} : vector<1x128xf32> to vector<1x32xf32>
    %331 = vector.extract_strided_slice %329 {offsets = [0, 0], sizes = [1, 32], strides = [1, 1]} : vector<1x128xf32> to vector<1x32xf32>
    %332 = arith.addf %330, %331 : vector<1x32xf32>
    %cst_121 = arith.constant dense<0.000000e+00> : vector<1x128xf32>
    %333 = tpu.matmul %332, %1, %cst_121 {dimension_numbers = #tpu.dot_dimension_numbers<[1], [0], [0], [1], [0, 0, 1, 1], [], []>} : vector<1x32xf32>, vector<32x128xf32>, vector<1x128xf32> -> vector<1x128xf32>
    %334 = arith.addf %333, %4 : vector<1x128xf32>
    %335 = arith.addf %334, %316 : vector<1x128xf32>
    %336 = vector.extract_strided_slice %335 {offsets = [0, 0], sizes = [1, 64], strides = [1, 1]} : vector<1x128xf32> to vector<1x64xf32>
    %337 = arith.negf %336 : vector<1x64xf32>
    %338 = math.exp %337 : vector<1x64xf32>
    %cst_122 = arith.constant 1.000000e+00 : f32
    %339 = vector.broadcast %cst_122 : f32 to vector<1x64xf32>
    %340 = arith.addf %339, %338 : vector<1x64xf32>
    %341 = arith.divf %339, %340 : vector<1x64xf32>
    %342 = vector.extract_strided_slice %341 {offsets = [0, 0], sizes = [1, 32], strides = [1, 1]} : vector<1x64xf32> to vector<1x32xf32>
    %343 = vector.extract_strided_slice %341 {offsets = [0, 32], sizes = [1, 32], strides = [1, 1]} : vector<1x64xf32> to vector<1x32xf32>
    %344 = vector.extract_strided_slice %334 {offsets = [0, 64], sizes = [1, 32], strides = [1, 1]} : vector<1x128xf32> to vector<1x32xf32>
    %345 = vector.extract_strided_slice %316 {offsets = [0, 64], sizes = [1, 32], strides = [1, 1]} : vector<1x128xf32> to vector<1x32xf32>
    %346 = arith.mulf %342, %345 : vector<1x32xf32>
    %347 = arith.addf %344, %346 : vector<1x32xf32>
    %348 = math.tanh %347 : vector<1x32xf32>
    %cst_123 = arith.constant 1.000000e+00 : f32
    %349 = vector.broadcast %cst_123 : f32 to vector<1x32xf32>
    %350 = arith.subf %349, %343 : vector<1x32xf32>
    %351 = arith.mulf %350, %348 : vector<1x32xf32>
    %352 = arith.mulf %343, %310 : vector<1x32xf32>
    %353 = arith.addf %351, %352 : vector<1x32xf32>
    %cst_124 = arith.constant dense<0.000000e+00> : vector<1x128xf32>
    %354 = tpu.matmul %353, %2, %cst_124 {dimension_numbers = #tpu.dot_dimension_numbers<[1], [0], [0], [1], [0, 0, 1, 1], [], []>} : vector<1x32xf32>, vector<32x128xf32>, vector<1x128xf32> -> vector<1x128xf32>
    %355 = arith.addf %354, %5 : vector<1x128xf32>
    %c6_125 = arith.constant 6 : index
    %c0_126 = arith.constant 0 : index
    %356 = vector.load %arg6[%c6_125, %c0_126] : memref<8x128xf32, #tpu.memory_space<vmem>>, vector<1x128xf32>
    tpu.vector_store %arg6[%c6_125, %c0_126], %355 {strides = array<i32>} : memref<8x128xf32, #tpu.memory_space<vmem>>, vector<1x128xf32>,
    %c6_127 = arith.constant 6 : index
    %c96_128 = arith.constant 96 : index
    %357 = vector.load %arg6[%c6_127, %c96_128] : memref<8x128xf32, #tpu.memory_space<vmem>>, vector<1x16xf32>
    tpu.vector_store %arg6[%c6_127, %c96_128], %328 {strides = array<i32>} : memref<8x128xf32, #tpu.memory_space<vmem>>, vector<1x16xf32>,
    %cst_129 = arith.constant dense<0.000000e+00> : vector<1x128xf32>
    %358 = tpu.matmul %353, %0, %cst_129 {dimension_numbers = #tpu.dot_dimension_numbers<[1], [0], [0], [1], [0, 0, 1, 1], [], []>} : vector<1x32xf32>, vector<32x128xf32>, vector<1x128xf32> -> vector<1x128xf32>
    %359 = arith.addf %358, %3 : vector<1x128xf32>
    %360 = vector.extract_strided_slice %55 {offsets = [0, 96], sizes = [1, 16], strides = [1, 1]} : vector<1x128xf32> to vector<1x16xf32>
    %361 = vector.extract_strided_slice %359 {offsets = [0, 96], sizes = [1, 16], strides = [1, 1]} : vector<1x128xf32> to vector<1x16xf32>
    %362 = arith.addf %360, %361 : vector<1x16xf32>
    %cst_130 = arith.constant dense<0xFF800000> : vector<1xf32>
    %363 = vector.multi_reduction <maximumf>, %362, %cst_130 [1] : vector<1x16xf32> to vector<1xf32>
    %364 = vector.shape_cast %363 : vector<1xf32> to vector<1x1xf32>
    %365 = vector.broadcast %364 : vector<1x1xf32> to vector<1x16xf32>
    %366 = arith.subf %362, %365 : vector<1x16xf32>
    %367 = math.exp %366 : vector<1x16xf32>
    %cst_131 = arith.constant dense<0.000000e+00> : vector<1xf32>
    %368 = vector.multi_reduction <add>, %367, %cst_131 [1] : vector<1x16xf32> to vector<1xf32>
    %369 = vector.shape_cast %368 : vector<1xf32> to vector<1x1xf32>
    %370 = vector.broadcast %369 : vector<1x1xf32> to vector<1x16xf32>
    %371 = arith.divf %367, %370 : vector<1x16xf32>
    %cst_132 = arith.constant dense<0.000000e+00> : vector<1x128xf32>
    %372 = tpu.matmul %371, %15, %cst_132 {dimension_numbers = #tpu.dot_dimension_numbers<[1], [0], [0], [1], [0, 0, 1, 1], [], []>} : vector<1x16xf32>, vector<16x128xf32>, vector<1x128xf32> -> vector<1x128xf32>
    %373 = vector.extract_strided_slice %55 {offsets = [0, 0], sizes = [1, 32], strides = [1, 1]} : vector<1x128xf32> to vector<1x32xf32>
    %374 = vector.extract_strided_slice %372 {offsets = [0, 0], sizes = [1, 32], strides = [1, 1]} : vector<1x128xf32> to vector<1x32xf32>
    %375 = arith.addf %373, %374 : vector<1x32xf32>
    %cst_133 = arith.constant dense<0.000000e+00> : vector<1x128xf32>
    %376 = tpu.matmul %375, %1, %cst_133 {dimension_numbers = #tpu.dot_dimension_numbers<[1], [0], [0], [1], [0, 0, 1, 1], [], []>} : vector<1x32xf32>, vector<32x128xf32>, vector<1x128xf32> -> vector<1x128xf32>
    %377 = arith.addf %376, %4 : vector<1x128xf32>
    %378 = arith.addf %377, %359 : vector<1x128xf32>
    %379 = vector.extract_strided_slice %378 {offsets = [0, 0], sizes = [1, 64], strides = [1, 1]} : vector<1x128xf32> to vector<1x64xf32>
    %380 = arith.negf %379 : vector<1x64xf32>
    %381 = math.exp %380 : vector<1x64xf32>
    %cst_134 = arith.constant 1.000000e+00 : f32
    %382 = vector.broadcast %cst_134 : f32 to vector<1x64xf32>
    %383 = arith.addf %382, %381 : vector<1x64xf32>
    %384 = arith.divf %382, %383 : vector<1x64xf32>
    %385 = vector.extract_strided_slice %384 {offsets = [0, 0], sizes = [1, 32], strides = [1, 1]} : vector<1x64xf32> to vector<1x32xf32>
    %386 = vector.extract_strided_slice %384 {offsets = [0, 32], sizes = [1, 32], strides = [1, 1]} : vector<1x64xf32> to vector<1x32xf32>
    %387 = vector.extract_strided_slice %377 {offsets = [0, 64], sizes = [1, 32], strides = [1, 1]} : vector<1x128xf32> to vector<1x32xf32>
    %388 = vector.extract_strided_slice %359 {offsets = [0, 64], sizes = [1, 32], strides = [1, 1]} : vector<1x128xf32> to vector<1x32xf32>
    %389 = arith.mulf %385, %388 : vector<1x32xf32>
    %390 = arith.addf %387, %389 : vector<1x32xf32>
    %391 = math.tanh %390 : vector<1x32xf32>
    %cst_135 = arith.constant 1.000000e+00 : f32
    %392 = vector.broadcast %cst_135 : f32 to vector<1x32xf32>
    %393 = arith.subf %392, %386 : vector<1x32xf32>
    %394 = arith.mulf %393, %391 : vector<1x32xf32>
    %395 = arith.mulf %386, %353 : vector<1x32xf32>
    %396 = arith.addf %394, %395 : vector<1x32xf32>
    %cst_136 = arith.constant dense<0.000000e+00> : vector<1x128xf32>
    %397 = tpu.matmul %396, %2, %cst_136 {dimension_numbers = #tpu.dot_dimension_numbers<[1], [0], [0], [1], [0, 0, 1, 1], [], []>} : vector<1x32xf32>, vector<32x128xf32>, vector<1x128xf32> -> vector<1x128xf32>
    %398 = arith.addf %397, %5 : vector<1x128xf32>
    %c7_137 = arith.constant 7 : index
    %c0_138 = arith.constant 0 : index
    %399 = vector.load %arg6[%c7_137, %c0_138] : memref<8x128xf32, #tpu.memory_space<vmem>>, vector<1x128xf32>
    tpu.vector_store %arg6[%c7_137, %c0_138], %398 {strides = array<i32>} : memref<8x128xf32, #tpu.memory_space<vmem>>, vector<1x128xf32>,
    %c7_139 = arith.constant 7 : index
    %c96_140 = arith.constant 96 : index
    %400 = vector.load %arg6[%c7_139, %c96_140] : memref<8x128xf32, #tpu.memory_space<vmem>>, vector<1x16xf32>
    tpu.vector_store %arg6[%c7_139, %c96_140], %371 {strides = array<i32>} : memref<8x128xf32, #tpu.memory_space<vmem>>, vector<1x16xf32>,
    return
  }
}

</mosaic_0001>

<bundles_post_ra>
// kernel: attention_decoder_decode.1
= control target key start
LH: loop header
LB: loop body
LE: loop exit
PB: predicated region body
PF: predicated region fallthrough
CT: control target
= control target key end

     0   :  { %11 = vsyncpa [#allocation5], 0  ;;  %s4602_s0 = inlined_call_operand.vmem [shape: s32[8], index: 0, kind: input, shape index: {}]   ;;  %s4603_s1 = inlined_call_operand.vmem [shape: f32[1,32], index: 1, kind: input, shape index: {}]   ;;  %s4604_s2 = inlined_call_operand.vmem [shape: f32[16,32], index: 2, kind: input, shape index: {}]   ;;  %s4605_s3 = inlined_call_operand.vmem [shape: f32[64,32], index: 3, kind: input, shape index: {}]   ;;  %s4606_s4 = inlined_call_operand.hbm [shape: f32[160,128], index: 4, kind: input, shape index: {}]   ;;  %s4607_s5 = inlined_call_operand.vmem [shape: f32[8,128], index: 5, kind: input, shape index: {}]   ;;  %s4608_s6 = inlined_call_operand.vmem [shape: f32[8,128], index: 6, kind: output, shape index: {}]  }
   0x1   :  { %s19_s23 = sshll.u32 %s4602_s0, 4  ;;  %s20_s23 = int_to_ptr.vmem [resolvable:$true] %s19_s23 }
   0x2   :  { %12 = vsyncpa [#allocation4], 0  ;;  %s3999_s24 = scalar_lea.vmem %s20_s23, 16  ;;  %p4004_p1 = scmp.lt.s32.totalorder %s20_s23, %s20_s23 }
   0x3   :  { %p4000_p0 = scmp.ne.s32.totalorder %s20_s23, %s3999_s24  ;;  %p4005_p2 = scmp.lt.s32.totalorder %s3999_s24, %s3999_s24 }
   0x5   :  { %p4006_p3 = por %p4005_p2, %p4004_p1 }
   0x7   :  { %p4007_p4 = pnand %p4006_p3, %p4000_p0 }
   0x9   :  { %4010 = shalt.err (!%p4007_p4)
}
   0xa   :  { %s4037_s25 = smov [#allocation3]   ;;  %s4038_s26 = smov [#allocation6]  }
   0xb   :  { %22 = dma.vmem_to_smem %s20_s23, 16, %s4037_s25, [#allocation5]  }
   0xc   :  { %s34_s27 = sshll.u32 %s4038_s26, 4  ;;  %s4011_s30 = scalar_lea.hbm %s4606_s4, 2560  ;;  %s35_s27 = int_to_ptr.vmem [resolvable:$true] %s34_s27 }
   0xd   :  { %p4012_p5 = scmp.ne.s32.totalorder %s4606_s4, %s4011_s30  ;;  %p4015_p6 = scmp.lt.u32.totalorder %s4011_s30, %s4606_s4 }
   0xf   :  { %p4017_p7 = pnand %p4015_p6, %p4012_p5 }
  0x11   :  { %4020 = shalt.err (!%p4017_p7)
}
  0x12   :  { %s4021_s10 = scalar_lea.vmem %s35_s27, 2560  ;;  %p4026_p9 = scmp.lt.s32.totalorder %s35_s27, %s35_s27 }
  0x13   :  { %p4022_p8 = scmp.ne.s32.totalorder %s35_s27, %s4021_s10  ;;  %p4027_p10 = scmp.lt.s32.totalorder %s4021_s10, %s4021_s10 }
  0x15   :  { %p4028_p11 = por %p4027_p10, %p4026_p9 }
  0x17   :  { %p4029_p12 = pnand %p4028_p11, %p4022_p8 }
  0x19   :  { %4032 = shalt.err (!%p4029_p12)
}
  0x1a   :  { %s4039_s11 = smov 128   ;;  %s4040_s12 = smov 8  }
  0x1b   :  { %40 = dma.hbm_to_vmem [thread:$0]  %s4606_s4, 2560, %s35_s27, [#allocation4], %s4039_s11, %s4039_s11, %s4040_s12  }
  0x1c   :  { %4033 = dma.done.wait [#allocation5], 16  }
  0x1d   :  { %4034 = vsyncadd [#allocation5], 4294967280 }
  0x1e   :  { %4035 = dma.done.wait [#allocation4], 2560  }
  0x1f   :  { %4036 = vsyncadd [#allocation4], 4294964736 }
  0x20   :  { %49 = sfence }
  0x21   :  { %v73_v0 = vld [vmem:[#allocation6 + $0x60] sm:$0xff]  ;;  %v74_v1 = vld [vmem:[#allocation6 + $0x68] sm:$0xff]  ;;  %v75_v2 = vld [vmem:[#allocation6 + $0x70] sm:$0xff]  ;;  %vm82_vm0 = vcmask 261120   ;;  %v4041_v18 = vmov 0.0|0.0   ;;  %vm4042_vm1 = vmmov 0  }
  0x22   :  { %v3722_v3 = vpack.c.bf16 %v74_v1, %v73_v0  ;;  %v76_v4 = vld [vmem:[#allocation6 + $0x78] sm:$0xff]  ;;  %v65_v5 = vld [vmem:[%s4605_s3] sm:$0xff]  ;;  %v223_v8 = vld [vmem:[#allocation6 + $0x88] sm:$0xff]  ;;  %v4043_v28 = vmov 0.0   ;;  %s4163_s11 = sld [smem:[#allocation3]]  ;;  %vm438_vm2 = vcmask 910080  }
  0x23   :  { %v3726_v6 = vpack.c.bf16 %v76_v4, %v75_v2  ;;  %3379 = vmatprep.mubr.msk.f32.mxu0 %vm82_vm0, %v65_v5  ;;  %v222_v7 = vld [vmem:[#allocation6 + $0x80] sm:$0xff]  ;;  %v224_v10 = vld [vmem:[#allocation6 + $0x90] sm:$0xff]  ;;  %v225_v11 = vld [vmem:[#allocation6 + $0x98] sm:$0xff]  ;;  %s4044_s14 = smov 32   ;;  %vm449_vm3 = vcmask 122880   ;;  %s4045_s15 = smov 64  }
  0x24   :  { %3723 = vmatprep.subr.bf16.mxu0 %v3722_v3  ;;  %v3730_v9 = vpack.c.bf16 %v223_v8, %v222_v7  ;;  %v3734_v12 = vpack.c.bf16 %v225_v11, %v224_v10  ;;  %v220_v13 = vld [vmem:[%s4604_s2] sm:$0xff]  ;;  %v66_v14 = vld [vmem:[%s4605_s3 + $0x8] sm:$0xff]  ;;  %v67_v17 = vld [vmem:[%s4605_s3 + $0x10] sm:$0xff]  ;;  %vm458_vm4 = vcmask 130048   ;;  %s4046_s17 = smov 96   ;;  %s3111_s18 = sld [smem:[#allocation3 + $0x1]] }
  0x25   :  { %3725 = vmatpush3.bf16.msra.mxu0 %v3722_v3  ;;  %3399 = vmatprep.mubr.msk.f32.mxu1 %vm82_vm0, %v220_v13  ;;  %v50_v15 = vld [vmem:[#allocation6] sm:$0xff]  ;;  %v51_v16 = vld [vmem:[#allocation6 + $0x8] sm:$0xff]  ;;  %v68_v21 = vld [vmem:[%s4605_s3 + $0x18] sm:$0xff]  ;;  %s3117_s27 = sld [smem:[#allocation3 + $0x2]]  ;;  %s3123_s0 = sld [smem:[#allocation3 + $0x3]] }
  0x26   :  { %3727 = vmatprep.subr.bf16.mxu0 %v3726_v6  ;;  %3731 = vmatprep.subr.bf16.mxu1 %v3730_v9  ;;  %v221_v19 = vld [vmem:[%s4604_s2 + $0x8] sm:$0xff]  ;;  %v4116_v20 = vpack.c.bf16 %v51_v16, %v50_v15  ;;  %v52_v22 = vld [vmem:[#allocation6 + $0x10] sm:$0xff]  ;;  %v53_v23 = vld [vmem:[#allocation6 + $0x18] sm:$0xff]  ;;  %s3135_s20 = sld [smem:[#allocation3 + $0x5]]  ;;  %s3141_s26 = sld [smem:[#allocation3 + $0x6]] }
  0x27   :  { %3733 = vmatpush3.bf16.msra.mxu1 %v3730_v9  ;;  %v69_v24 = vld [vmem:[%s4605_s3 + $0x20] sm:$0xff]  ;;  %v4129_v25 = vpack.c.bf16 %v53_v23, %v52_v22  ;;  %v70_v26 = vld [vmem:[%s4605_s3 + $0x28] sm:$0xff]  ;;  %v71_v27 = vld [vmem:[%s4605_s3 + $0x30] sm:$0xff]  ;;  %v629_v23 = vlaneseq  ;;  %s3147_s10 = sld [smem:[#allocation3 + $0x7]] }
  0x28   :  { %3735 = vmatprep.subr.bf16.mxu1 %v3734_v12  ;;  %v4146_v29 = vld [vmem:[%s4603_s1] sm:$0x1]  ;;  %v72_v30 = vld [vmem:[%s4605_s3 + $0x38] sm:$0xff]  ;;  %p308_p13 = scmp.gt.s32.totalorder %s4163_s11, 0  ;;  %p3106_p0 = scmp.lt.s32.totalorder %s4163_s11, 63  ;;  %v55_v2 = vld [vmem:[#allocation6 + $0x28] sm:$0xff] }
  0x29   :  { %3729 = vmatpush3.bf16.msra.mxu0 %v3726_v6  ;;  %v3095_v31 = vld [vmem:[%s4607_s5] ss:$0 sm:$0xff]  ;;  %v4175_v53 = vld [vmem:[%s4607_s5 + $0x1] sm:$0x1]  ;;  %v56_v3 = vld [vmem:[#allocation6 + $0x30] sm:$0xff]  ;;  %s3129_s3 = sld [smem:[#allocation3 + $0x4]] }
  0x2a   :  { %3747 = vmatprep.subr.bf16.mxu0 %v4041_v18  ;;  %s4610_s11 = smov (!%p308_p13, %s4163_s11), 0  ;;  %v54_v1 = vld [vmem:[#allocation6 + $0x20] sm:$0xff]  ;;  %v57_v5 = vld [vmem:[#allocation6 + $0x38] sm:$0xff]  ;;  %p315_p1 = scmp.gt.s32.totalorder %s3111_s18, 0 }
  0x2b   :  { %3737 = vmatpush3.bf16.msra.mxu1 %v3734_v12  ;;  %s4612_s11 = smov (!%p3106_p0, %s4610_s11), 63  ;;  %v4181_v4 = vpack.c.bf16 %v55_v2, %v54_v1  ;;  %v4184_v6 = vpack.c.bf16 %v57_v5, %v56_v3  ;;  %v4207_v13 = vld [vmem:[%s4607_s5 + $0x2] sm:$0x1]  ;;  %p3112_p2 = scmp.lt.s32.totalorder %s3111_s18, 63 }
  0x2c   :  { %3380 = vmatmul.mubr.msk.f32.vlgmr.msra.gmra.mrb[0].mxu0 %vm82_vm0, %v66_v14  ;;  %3738 = vmatprep.subr.bf16.mxu1 %v4041_v18  ;;  %s312_s13 = scalar_lea.vmem [#allocation2], %s4612_s11  ;;  %p322_p3 = scmp.gt.s32.totalorder %s3117_s27, 0 }
  0x2d   :  { %3382 = vmatprep.mubr.msk.f32.mxu0 %vm82_vm0, %v67_v17  ;;  %3749 = vmatpush3.bf16.msra.mxu0 %v4181_v4  ;;  %s316_s19 = scalar_select %p315_p1, %s3111_s18, 0 }
  0x2e   :  { %3400 = vmatmul.mubr.msk.f32.vlgmr.msra.gmra.mrb[0].mxu1 %vm82_vm0, %v221_v19  ;;  %3750 = vmatprep.subr.bf16.mxu0 %v4041_v18  ;;  %p3118_p4 = scmp.lt.s32.totalorder %s3117_s27, 63  ;;  %s4616_s27 = smov (!%p322_p3, %s3117_s27), 0 }
  0x2f   :  { %3740 = vmatpush3.bf16.msra.mxu1 %v4116_v20  ;;  %3410 = vmatprep.mubr.msk.f32.mxu1 %vm4042_vm1, %v4043_v28  ;;  %s4614_s19 = smov (!%p3112_p2, %s316_s19), 63  ;;  %p329_p5 = scmp.gt.s32.totalorder %s3123_s0, 0 }
  0x30   :  { %3383 = vmatmul.mubr.msk.f32.gmra.mrb[2].mxu0 %vm82_vm0, %v68_v21  ;;  %3741 = vmatprep.subr.bf16.mxu1 %v4041_v18  ;;  %s319_s22 = scalar_lea.vmem [#allocation2], %s4614_s19  ;;  %s4618_s27 = smov (!%p3118_p4, %s4616_s27), 63 }
  0x31   :  { %3385 = vmatprep.mubr.msk.f32.mxu0 %vm82_vm0, %v69_v24  ;;  %3752 = vmatpush3.bf16.msra.mxu0 %v4184_v6  ;;  %v630_v24 = vshrl.u32 %v629_v23, 7  ;;  %s326_s2 = scalar_lea.vmem [#allocation2], %s4618_s27  ;;  %p3124_p6 = scmp.lt.s32.totalorder %s3123_s0, 63 }
  0x32   :  { %3759 = vmatprep.subr.bf16.mxu0 %v4041_v18  ;;  %s4620_s0 = smov (!%p329_p5, %s3123_s0), 0  ;;  %p336_p7 = scmp.gt.s32.totalorder %s3129_s3, 0 }
  0x33   :  { %3743 = vmatpush3.bf16.msra.mxu1 %v4129_v25  ;;  %s4622_s0 = smov (!%p3124_p6, %s4620_s0), 63  ;;  %p3130_p8 = scmp.lt.s32.totalorder %s3129_s3, 63 }
  0x34   :  { %3386 = vmatmul.mubr.msk.f32.gmra.mrb[4].mxu0 %vm82_vm0, %v70_v26  ;;  %3744 = vmatprep.subr.bf16.mxu1 %v4041_v18  ;;  %v631_v26 = vsub.s32 0, %v630_v24  ;;  %s333_s8 = scalar_lea.vmem [#allocation2], %s4622_s0  ;;  %p343_p9 = scmp.gt.s32.totalorder %s3135_s20, 0 }
  0x35   :  { %3388 = vmatprep.mubr.msk.f32.mxu0 %vm82_vm0, %v71_v27  ;;  %s337_s12 = scalar_select %p336_p7, %s3129_s3, 0 }
  0x36   :  { %3411 = vmatmul.mubr.msk.f32.vlgmr.msra.gmra.mrb[2].mxu1 %vm82_vm0, %v4146_v29  ;;  %p3136_p10 = scmp.lt.s32.totalorder %s3135_s20, 63  ;;  %s4626_s20 = smov (!%p343_p9, %s3135_s20), 0 }
  0x37   :  { %3417 = vmatprep.mubr.msk.f32.mxu1 %vm4042_vm1, %v4043_v28  ;;  %s4624_s12 = smov (!%p3130_p8, %s337_s12), 63  ;;  %p350_p11 = scmp.gt.s32.totalorder %s3141_s26, 0 }
  0x38   :  { %3389 = vmatmul.mubr.msk.f32.gmra.mrb[6].mxu0 %vm82_vm0, %v72_v30  ;;  %s4628_s20 = smov (!%p3136_p10, %s4626_s20), 63  ;;  %p3142_p12 = scmp.lt.s32.totalorder %s3141_s26, 63 }
  0x39   :  { %3428 = vmatprep.mubr.msk.f32.mxu0 %vm4042_vm1, %v4043_v28  ;;  %s347_s21 = scalar_lea.vmem [#allocation2], %s4628_s20  ;;  %p357_p13 = scmp.gt.s32.totalorder %s3147_s10, 0 }
  0x3a   :  { %s351_s27 = scalar_select %p350_p11, %s3141_s26, 0 }
  0x3b   :  { %p3148_p0 = scmp.lt.s32.totalorder %s3147_s10, 63  ;;  %s4632_s10 = smov (!%p357_p13, %s3147_s10), 0 }
  0x3c   :  { %s4630_s27 = smov (!%p3142_p12, %s351_s27), 63 }
  0x3d   :  { %s354_s29 = scalar_lea.vmem [#allocation2], %s4630_s27  ;;  %s4634_s10 = smov (!%p3148_p0, %s4632_s10), 63 }
  0x3e   :  { %s361_s11 = scalar_lea.vmem [#allocation2], %s4634_s10 }
  0xff   :  { %v3381_v32 = vpop.f32.mrb[0].mxu0 }
 0x100   :  { %v179_v33 = vadd.f32 %v3381_v32, %v3095_v31  ;;  %v173_v34 = vpop.f32.mrb[1].mxu0  ;;  %v632_v32 = vrot.slane %v4146_v29, %v631_v26 }
 0x101   :  { %v174_v35 = vadd.f32 %v3095_v31, %v173_v34  ;;  %v3401_v36 = vpop.f32.mrb[0].mxu1 }
 0x102   :  { %213 = vst [vmem:[#allocation2 + $0x8] sm:$0xff] %v179_v33  ;;  %v298_v38 = vpop.f32.mrb[1].mxu1 }
 0x103   :  { %212 = vst [vmem:[#allocation2] sm:$0xff] %v174_v35  ;;  %v3384_v37 = vpop.f32.mrb[2].mxu0  ;;  %v4165_v41 = vpack.c.bf16 %v3401_v36, %v298_v38  ;;  %v58_v35 = vld [vmem:[#allocation6 + $0x40] sm:$0xff]  ;;  %v59_v36 = vld [vmem:[#allocation6 + $0x48] sm:$0xff] }
 0x104   :  { %v189_v39 = vadd.f32 %v3384_v37, %v3095_v31  ;;  %v183_v40 = vpop.f32.mrb[3].mxu0  ;;  %v60_v37 = vld [vmem:[#allocation6 + $0x50] sm:$0xff]  ;;  %v4213_v38 = vpack.c.bf16 %v59_v36, %v58_v35 }
 0x105   :  { %v184_v42 = vadd.f32 %v3095_v31, %v183_v40  ;;  %3746 = vmatpush3.bf16.msra.mxu1 %v4165_v41 }
 0x106   :  { %215 = vst [vmem:[#allocation2 + $0x18] sm:$0xff] %v189_v39  ;;  %3753 = vmatprep.subr.bf16.mxu1 %v4041_v18  ;;  %v61_v39 = vld [vmem:[#allocation6 + $0x58] sm:$0xff] }
 0x107   :  { %214 = vst [vmem:[#allocation2 + $0x10] sm:$0xff] %v184_v42  ;;  %v3387_v43 = vpop.f32.mrb[4].mxu0  ;;  %v4216_v40 = vpack.c.bf16 %v61_v39, %v60_v37 }
 0x108   :  { %v199_v44 = vadd.f32 %v3387_v43, %v3095_v31  ;;  %v193_v45 = vpop.f32.mrb[5].mxu0 }
 0x109   :  { %v194_v46 = vadd.f32 %v3095_v31, %v193_v45  ;;  %v433_v47 = vpop.f32.mrb[2].mxu1 }
 0x10a   :  { %217 = vst [vmem:[#allocation2 + $0x28] sm:$0xff] %v199_v44  ;;  %v3412_v49 = vpop.f32.mrb[3].mxu1  ;;  %v434_v54 = vadd.f32 %v433_v47, %v4175_v53 }
 0x10b   :  { %216 = vst [vmem:[#allocation2 + $0x20] sm:$0xff] %v194_v46  ;;  %v3390_v48 = vpop.f32.mrb[6].mxu0  ;;  %v4241_v49 = vld [vmem:[%s4607_s5 + $0x3] sm:$0x1] }
 0x10c   :  { %v209_v50 = vadd.f32 %v3390_v48, %v3095_v31  ;;  %v203_v51 = vpop.f32.mrb[7].mxu0 }
 0x10d   :  { %v204_v52 = vadd.f32 %v3095_v31, %v203_v51 }
 0x10e   :  { %219 = vst [vmem:[#allocation2 + $0x38] sm:$0xff] %v209_v50 }
 0x10f   :  { %218 = vst [vmem:[#allocation2 + $0x30] sm:$0xff] %v204_v52 }
 0x116   :  { %v313_v55 = vld [vmem:[%s312_s13] sm:$0x1]  ;;  %s340_s13 = scalar_lea.vmem [#allocation2], %s4624_s12 }
 0x117   :  { %v437_v56 = vadd.f32 %v434_v54, %v313_v55 }
 0x119   :  { %v439_v57 = vsel %vm438_vm2, %v437_v56, -inf }
 0x11a   :  { %440 = vmax.xlane.f32.xlu0 %v439_v57  ;;  %v320_v57 = vld [vmem:[%s319_s22] sm:$0x1] }
 0x1a7   :  { %v441_v58 = vpop.xlane.xlu0 %440 }
 0x1a8   :  { %v442_v59 = vsub.f32 %v437_v56, %v441_v58 }
 0x1aa   :  { %v443_v60 = vmul.f32 1.442695, %v442_v59 }
 0x1ac   :  { %3916 = vpow2.f32 %v443_v60 }
 0x1b6   :  { %v3917_v61 = vpop.eup %3916 }
 0x1b7   :  { %446 = vrot.lane.b32.xlu0 %v3917_v61, %s4044_s14 }
 0x229   :  { %v447_v62 = vpop.permute.xlu0 %446 }
 0x22a   :  { %v450_v63 = vsel %vm449_vm3, %v447_v62, 0.0 }
 0x22b   :  { %451 = vadd.xlane.f32.xlu1 %v450_v63 }
 0x2b8   :  { %v452_v0 = vpop.xlane.xlu1 %451 }
 0x2b9   :  { %3918 = vrcp.f32 %v452_v0 }
 0x2c3   :  { %v3919_v7 = vpop.eup %3918 }
 0x2c4   :  { %v4188_v8 = vmul.f32 %v3919_v7, %v3917_v61 }
 0x2c6   :  { %456 = vrot.lane.b32.xlu1 %v4188_v8, %s4044_s14 }
 0x2ca   :  { %613 = vrot.lane.b32.xlu1 %v434_v54, %s4045_s15 }
 0x338   :  { %v457_v9 = vpop.permute.xlu1 %456 }
 0x339   :  { %3418 = vmatmul.mubr.msk.f32.vlgmr.msra.gmra.mrb[4].mxu1 %vm458_vm4, %v457_v9 }
 0x33a   :  { %3439 = vmatprep.mubr.msk.f32.mxu1 %vm4042_vm1, %v4043_v28  ;;  %3755 = vmatpush3.bf16.msra.mxu1 %v4213_v38 }
 0x33b   :  { %3756 = vmatprep.subr.bf16.mxu1 %v4041_v18 }
 0x33c   :  { %v614_v30 = vpop.permute.xlu1 %613 }
 0x33e   :  { %3758 = vmatpush3.bf16.msra.mxu1 %v4216_v40 }
 0x33f   :  { %3765 = vmatprep.subr.bf16.mxu1 %v4041_v18 }
 0x40c   :  { %v527_v10 = vpop.f32.mrb[4].mxu1 }
 0x40d   :  { %v531_v11 = vadd.f32 %v527_v10, %v313_v55  ;;  %v3419_v12 = vpop.f32.mrb[5].mxu1 }
 0x40f   :  { %3429 = vmatmul.mubr.msk.f32.vlgmr.msra.gmra.mrb[8].mxu0 %vm82_vm0, %v531_v11 }
 0x410   :  { %3761 = vmatpush3.bf16.msra.mxu0 %v4116_v20  ;;  %3450 = vmatprep.mubr.msk.f32.mxu0 %vm4042_vm1, %v4043_v28 }
 0x411   :  { %3762 = vmatprep.subr.bf16.mxu0 %v4041_v18 }
 0x414   :  { %3764 = vmatpush3.bf16.msra.mxu0 %v4129_v25 }
 0x415   :  { %3768 = vmatprep.subr.bf16.mxu0 %v4041_v18 }
 0x4e2   :  { %v601_v14 = vpop.f32.mrb[8].mxu0 }
 0x4e3   :  { %v602_v15 = vadd.f32 %v601_v14, %v4207_v13  ;;  %v3430_v16 = vpop.f32.mrb[9].mxu0 }
 0x4e5   :  { %v605_v17 = vadd.f32 %v602_v15, %v434_v54 }
 0x4e7   :  { %v3156_v19 = vmul.f32 -1.442695, %v605_v17 }
 0x4e9   :  { %3920 = vpow2.f32 %v3156_v19 }
 0x4f3   :  { %v3921_v21 = vpop.eup %3920 }
 0x4f4   :  { %v609_v22 = vadd.f32 1.0, %v3921_v21 }
 0x4f6   :  { %3922 = vrcp.f32 %v609_v22 }
 0x500   :  { %v3923_v27 = vpop.eup %3922 }
 0x501   :  { %v616_v31 = vmul.f32 %v3923_v27, %v614_v30  ;;  %v623_v43 = vsub.f32 1.0, %v3923_v27 }
 0x503   :  { %618 = vrot.lane.b32.xlu1 %v616_v31, %s4045_s15 }
 0x507   :  { %633 = vrot.lane.b32.xlu1 %v632_v32, %s4044_s14 }
 0x575   :  { %v619_v33 = vpop.permute.xlu1 %618 }
 0x576   :  { %v621_v34 = vadd.f32 %v619_v33, %v602_v15 }
 0x578   :  { %3924 = vtanh.f32 %v621_v34 }
 0x579   :  { %v634_v42 = vpop.permute.xlu1 %633 }
 0x57a   :  { %v636_v45 = vmul.f32 %v3923_v27, %v634_v42 }
 0x582   :  { %v3925_v29 = vpop.eup %3924 }
 0x583   :  { %625 = vrot.lane.b32.xlu0 %v3925_v29, %s4046_s17 }
 0x5f5   :  { %v626_v44 = vpop.permute.xlu0 %625 }
 0x5f6   :  { %v628_v46 = vmul.f32 %v626_v44, %v623_v43  ;;  %v327_v44 = vld [vmem:[%s326_s2] sm:$0x1] }
 0x5f8   :  { %v4222_v47 = vadd.f32 %v636_v45, %v628_v46 }
 0x5fa   :  { %639 = vrot.lane.b32.xlu0 %v4222_v47, %s4046_s17 }
 0x66c   :  { %v640_v48 = vpop.permute.xlu0 %639 }
 0x66d   :  { %3440 = vmatmul.mubr.msk.f32.vlgmr.msra.gmra.mrb[6].mxu1 %vm82_vm0, %v640_v48  ;;  %3451 = vmatmul.mubr.msk.f32.vlgmr.msra.gmra.mrb[10].mxu0 %vm82_vm0, %v640_v48 }
 0x66e   :  { %3767 = vmatpush3.bf16.msra.mxu1 %v4165_v41  ;;  %3457 = vmatprep.mubr.msk.f32.mxu1 %vm4042_vm1, %v4043_v28 }
 0x66f   :  { %3770 = vmatpush3.bf16.msra.mxu0 %v4181_v4  ;;  %3468 = vmatprep.mubr.msk.f32.mxu0 %vm4042_vm1, %v4043_v28 }
 0x670   :  { %3771 = vmatprep.subr.bf16.mxu0 %v4041_v18  ;;  %3774 = vmatprep.subr.bf16.mxu1 %v4041_v18 }
 0x673   :  { %3773 = vmatpush3.bf16.msra.mxu0 %v4184_v6 }
 0x674   :  { %3780 = vmatprep.subr.bf16.mxu0 %v4041_v18 }
 0x740   :  { %v709_v50 = vpop.f32.mrb[6].mxu1  ;;  %v781_v51 = vpop.f32.mrb[10].mxu0 }
 0x741   :  { %v710_v52 = vadd.f32 %v709_v50, %v4241_v49  ;;  %v782_v54 = vadd.f32 %v781_v51, %v4175_v53  ;;  %v3441_v55 = vpop.f32.mrb[7].mxu1  ;;  %v3452_v56 = vpop.f32.mrb[11].mxu0 }
 0x743   :  { %713 = vst [vmem:[%s4608_s6] sm:$0x1] %v710_v52  ;;  %v785_v58 = vadd.f32 %v782_v54, %v320_v57 }
 0x744   :  { %714 = vst.msk [vmem:[%s4608_s6] sm:$0x1] %vm438_vm2, %v4188_v8 }
 0x745   :  { %v786_v59 = vsel %vm438_vm2, %v785_v58, -inf }
 0x746   :  { %787 = vmax.xlane.f32.xlu1 %v786_v59 }
 0x757   :  { %958 = vrot.lane.b32.xlu1 %v782_v54, %s4045_s15 }
 0x7d3   :  { %v788_v60 = vpop.xlane.xlu1 %787 }
 0x7d4   :  { %v789_v61 = vsub.f32 %v785_v58, %v788_v60 }
 0x7d6   :  { %v790_v62 = vmul.f32 1.442695, %v789_v61 }
 0x7d7   :  { %v959_v22 = vpop.permute.xlu1 %958 }
 0x7d8   :  { %3926 = vpow2.f32 %v790_v62 }
 0x7e2   :  { %v3927_v63 = vpop.eup %3926 }
 0x7e3   :  { %793 = vrot.lane.b32.xlu0 %v3927_v63, %s4044_s14 }
 0x855   :  { %v794_v0 = vpop.permute.xlu0 %793 }
 0x856   :  { %v796_v1 = vsel %vm449_vm3, %v794_v0, 0.0 }
 0x857   :  { %797 = vadd.xlane.f32.xlu0 %v796_v1 }
 0x8e4   :  { %v798_v2 = vpop.xlane.xlu0 %797 }
 0x8e5   :  { %3928 = vrcp.f32 %v798_v2 }
 0x8ef   :  { %v3929_v3 = vpop.eup %3928 }
 0x8f0   :  { %v4257_v5 = vmul.f32 %v3929_v3, %v3927_v63 }
 0x8f2   :  { %802 = vrot.lane.b32.xlu0 %v4257_v5, %s4044_s14 }
 0x964   :  { %v803_v7 = vpop.permute.xlu0 %802 }
 0x965   :  { %3458 = vmatmul.mubr.msk.f32.vlgmr.msra.gmra.mrb[8].mxu1 %vm458_vm4, %v803_v7 }
 0x966   :  { %3776 = vmatpush3.bf16.msra.mxu1 %v4213_v38  ;;  %3479 = vmatprep.mubr.msk.f32.mxu1 %vm4042_vm1, %v4043_v28 }
 0x967   :  { %3777 = vmatprep.subr.bf16.mxu1 %v4041_v18 }
 0x96a   :  { %3779 = vmatpush3.bf16.msra.mxu1 %v4216_v40 }
 0x96b   :  { %3786 = vmatprep.subr.bf16.mxu1 %v4041_v18 }
 0xa38   :  { %v872_v8 = vpop.f32.mrb[8].mxu1 }
 0xa39   :  { %v876_v9 = vadd.f32 %v872_v8, %v320_v57  ;;  %v3459_v10 = vpop.f32.mrb[9].mxu1 }
 0xa3b   :  { %3469 = vmatmul.mubr.msk.f32.vlgmr.msra.gmra.mrb[12].mxu0 %vm82_vm0, %v876_v9 }
 0xa3c   :  { %3782 = vmatpush3.bf16.msra.mxu0 %v4116_v20  ;;  %3490 = vmatprep.mubr.msk.f32.mxu0 %vm4042_vm1, %v4043_v28 }
 0xa3d   :  { %3783 = vmatprep.subr.bf16.mxu0 %v4041_v18 }
 0xa40   :  { %3785 = vmatpush3.bf16.msra.mxu0 %v4129_v25 }
 0xa41   :  { %3795 = vmatprep.subr.bf16.mxu0 %v4041_v18 }
 0xb0e   :  { %v946_v11 = vpop.f32.mrb[12].mxu0 }
 0xb0f   :  { %v947_v12 = vadd.f32 %v946_v11, %v4207_v13  ;;  %v3470_v14 = vpop.f32.mrb[13].mxu0 }
 0xb11   :  { %v950_v15 = vadd.f32 %v947_v12, %v782_v54 }
 0xb13   :  { %v3161_v16 = vmul.f32 -1.442695, %v950_v15 }
 0xb15   :  { %3930 = vpow2.f32 %v3161_v16 }
 0xb1f   :  { %v3931_v17 = vpop.eup %3930 }
 0xb20   :  { %v954_v19 = vadd.f32 1.0, %v3931_v17 }
 0xb22   :  { %3932 = vrcp.f32 %v954_v19 }
 0xb2c   :  { %v3933_v21 = vpop.eup %3932 }
 0xb2d   :  { %v961_v23 = vmul.f32 %v3933_v21, %v959_v22  ;;  %v968_v30 = vsub.f32 1.0, %v3933_v21  ;;  %v974_v32 = vmul.f32 %v3933_v21, %v4222_v47 }
 0xb2f   :  { %963 = vrot.lane.b32.xlu1 %v961_v23, %s4045_s15 }
 0xba1   :  { %v964_v24 = vpop.permute.xlu1 %963 }
 0xba2   :  { %v966_v26 = vadd.f32 %v964_v24, %v947_v12 }
 0xba4   :  { %3934 = vtanh.f32 %v966_v26 }
 0xbae   :  { %v3935_v27 = vpop.eup %3934 }
 0xbaf   :  { %970 = vrot.lane.b32.xlu1 %v3935_v27, %s4046_s17 }
 0xc21   :  { %v971_v31 = vpop.permute.xlu1 %970 }
 0xc22   :  { %v973_v33 = vmul.f32 %v971_v31, %v968_v30  ;;  %v334_v31 = vld [vmem:[%s333_s8] sm:$0x1] }
 0xc24   :  { %v4279_v34 = vadd.f32 %v974_v32, %v973_v33 }
 0xc26   :  { %977 = vrot.lane.b32.xlu0 %v4279_v34, %s4046_s17 }
 0xc98   :  { %v978_v35 = vpop.permute.xlu0 %977 }
 0xc99   :  { %3480 = vmatmul.mubr.msk.f32.vlgmr.msra.gmra.mrb[10].mxu1 %vm82_vm0, %v978_v35  ;;  %3491 = vmatmul.mubr.msk.f32.vlgmr.msra.gmra.mrb[14].mxu0 %vm82_vm0, %v978_v35 }
 0xc9a   :  { %3788 = vmatpush3.bf16.msra.mxu1 %v4165_v41  ;;  %3497 = vmatprep.mubr.msk.f32.mxu1 %vm4042_vm1, %v4043_v28 }
 0xc9b   :  { %3789 = vmatprep.subr.bf16.mxu1 %v4041_v18  ;;  %3797 = vmatpush3.bf16.msra.mxu0 %v4213_v38 }
 0xc9c   :  { %3798 = vmatprep.subr.bf16.mxu0 %v4041_v18  ;;  %3519 = vmatprep.mubr.msk.f32.mxu0 %vm4042_vm1, %v4043_v28 }
 0xc9f   :  { %3800 = vmatpush3.bf16.msra.mxu0 %v4216_v40 }
 0xca0   :  { %3807 = vmatprep.subr.bf16.mxu0 %v4041_v18 }
 0xd6c   :  { %v1047_v36 = vpop.f32.mrb[10].mxu1  ;;  %v1119_v37 = vpop.f32.mrb[14].mxu0 }
 0xd6d   :  { %v1048_v39 = vadd.f32 %v1047_v36, %v4241_v49  ;;  %v1120_v29 = vadd.f32 %v1119_v37, %v4175_v53  ;;  %v3481_v42 = vpop.f32.mrb[11].mxu1  ;;  %v3492_v43 = vpop.f32.mrb[15].mxu0 }
 0xd6f   :  { %1051 = vst [vmem:[%s4608_s6 + $0x1] sm:$0x1] %v1048_v39  ;;  %v1123_v45 = vadd.f32 %v1120_v29, %v327_v44 }
 0xd70   :  { %1052 = vst.msk [vmem:[%s4608_s6 + $0x1] sm:$0x1] %vm438_vm2, %v4257_v5 }
 0xd71   :  { %v1124_v46 = vsel %vm438_vm2, %v1123_v45, -inf }
 0xd72   :  { %1125 = vmax.xlane.f32.xlu1 %v1124_v46 }
 0xd83   :  { %1296 = vrot.lane.b32.xlu1 %v1120_v29, %s4045_s15 }
 0xdff   :  { %v1126_v47 = vpop.xlane.xlu1 %1125 }
 0xe00   :  { %v1127_v48 = vsub.f32 %v1123_v45, %v1126_v47 }
 0xe02   :  { %v1128_v50 = vmul.f32 1.442695, %v1127_v48 }
 0xe03   :  { %v1297_v8 = vpop.permute.xlu1 %1296 }
 0xe04   :  { %3936 = vpow2.f32 %v1128_v50 }
 0xe0e   :  { %v3937_v51 = vpop.eup %3936 }
 0xe0f   :  { %1131 = vrot.lane.b32.xlu0 %v3937_v51, %s4044_s14 }
 0xe81   :  { %v1132_v52 = vpop.permute.xlu0 %1131 }
 0xe82   :  { %v1134_v54 = vsel %vm449_vm3, %v1132_v52, 0.0 }
 0xe83   :  { %1135 = vadd.xlane.f32.xlu0 %v1134_v54 }
 0xf10   :  { %v1136_v55 = vpop.xlane.xlu0 %1135 }
 0xf11   :  { %3938 = vrcp.f32 %v1136_v55 }
 0xf1b   :  { %v3939_v56 = vpop.eup %3938 }
 0xf1c   :  { %v4309_v57 = vmul.f32 %v3939_v56, %v3937_v51 }
 0xf1e   :  { %1140 = vrot.lane.b32.xlu0 %v4309_v57, %s4044_s14 }
 0xf90   :  { %v1141_v58 = vpop.permute.xlu0 %1140 }
 0xf91   :  { %3498 = vmatmul.mubr.msk.f32.vlgmr.msra.gmra.mrb[12].mxu1 %vm458_vm4, %v1141_v58 }
 0xf92   :  { %3791 = vmatpush3.bf16.msra.mxu1 %v4181_v4  ;;  %3508 = vmatprep.mubr.msk.f32.mxu1 %vm4042_vm1, %v4043_v28 }
 0xf93   :  { %3792 = vmatprep.subr.bf16.mxu1 %v4041_v18 }
 0xf96   :  { %3794 = vmatpush3.bf16.msra.mxu1 %v4184_v6 }
 0xf97   :  { %3801 = vmatprep.subr.bf16.mxu1 %v4041_v18 }
0x1064   :  { %v1210_v59 = vpop.f32.mrb[12].mxu1 }
0x1065   :  { %v1214_v60 = vadd.f32 %v1210_v59, %v327_v44  ;;  %v3499_v61 = vpop.f32.mrb[13].mxu1 }
0x1067   :  { %3509 = vmatmul.mubr.msk.f32.vlgmr.msra.gmra.mrb[14].mxu1 %vm82_vm0, %v1214_v60 }
0x1068   :  { %3803 = vmatpush3.bf16.msra.mxu1 %v4116_v20  ;;  %3530 = vmatprep.mubr.msk.f32.mxu1 %vm4042_vm1, %v4043_v28 }
0x1069   :  { %3804 = vmatprep.subr.bf16.mxu1 %v4041_v18 }
0x106c   :  { %3806 = vmatpush3.bf16.msra.mxu1 %v4129_v25 }
0x106d   :  { %3816 = vmatprep.subr.bf16.mxu1 %v4041_v18 }
0x113a   :  { %v1284_v62 = vpop.f32.mrb[14].mxu1 }
0x113b   :  { %v1285_v63 = vadd.f32 %v1284_v62, %v4207_v13  ;;  %v3510_v0 = vpop.f32.mrb[15].mxu1 }
0x113d   :  { %v1288_v1 = vadd.f32 %v1285_v63, %v1120_v29 }
0x113f   :  { %v3166_v2 = vmul.f32 -1.442695, %v1288_v1 }
0x1141   :  { %3940 = vpow2.f32 %v3166_v2 }
0x114b   :  { %v3941_v3 = vpop.eup %3940 }
0x114c   :  { %v1292_v5 = vadd.f32 1.0, %v3941_v3 }
0x114e   :  { %3942 = vrcp.f32 %v1292_v5 }
0x1158   :  { %v3943_v7 = vpop.eup %3942 }
0x1159   :  { %v1299_v9 = vmul.f32 %v3943_v7, %v1297_v8  ;;  %v1306_v14 = vsub.f32 1.0, %v3943_v7  ;;  %v1312_v16 = vmul.f32 %v3943_v7, %v4279_v34 }
0x115b   :  { %1301 = vrot.lane.b32.xlu1 %v1299_v9, %s4045_s15 }
0x11cd   :  { %v1302_v10 = vpop.permute.xlu1 %1301 }
0x11ce   :  { %v1304_v11 = vadd.f32 %v1302_v10, %v1285_v63 }
0x11d0   :  { %3944 = vtanh.f32 %v1304_v11 }
0x11da   :  { %v3945_v12 = vpop.eup %3944 }
0x11db   :  { %1308 = vrot.lane.b32.xlu1 %v3945_v12, %s4046_s17 }
0x124d   :  { %v1309_v15 = vpop.permute.xlu1 %1308 }
0x124e   :  { %v1311_v17 = vmul.f32 %v1309_v15, %v1306_v14  ;;  %v341_v15 = vld [vmem:[%s340_s13] sm:$0x1] }
0x1250   :  { %v4331_v19 = vadd.f32 %v1312_v16, %v1311_v17 }
0x1252   :  { %1315 = vrot.lane.b32.xlu0 %v4331_v19, %s4046_s17 }
0x12c4   :  { %v1316_v21 = vpop.permute.xlu0 %1315 }
0x12c5   :  { %3520 = vmatmul.mubr.msk.f32.vlgmr.msra.gmra.mrb[16].mxu0 %vm82_vm0, %v1316_v21  ;;  %3531 = vmatmul.mubr.msk.f32.vlgmr.msra.gmra.mrb[16].mxu1 %vm82_vm0, %v1316_v21 }
0x12c6   :  { %3809 = vmatpush3.bf16.msra.mxu0 %v4165_v41  ;;  %3537 = vmatprep.mubr.msk.f32.mxu0 %vm4042_vm1, %v4043_v28 }
0x12c7   :  { %3810 = vmatprep.subr.bf16.mxu0 %v4041_v18  ;;  %3818 = vmatpush3.bf16.msra.mxu1 %v4213_v38 }
0x12c8   :  { %3819 = vmatprep.subr.bf16.mxu1 %v4041_v18  ;;  %3559 = vmatprep.mubr.msk.f32.mxu1 %vm4042_vm1, %v4043_v28 }
0x12cb   :  { %3821 = vmatpush3.bf16.msra.mxu1 %v4216_v40 }
0x12cc   :  { %3828 = vmatprep.subr.bf16.mxu1 %v4041_v18 }
0x1398   :  { %v1385_v22 = vpop.f32.mrb[16].mxu0  ;;  %v1457_v23 = vpop.f32.mrb[16].mxu1 }
0x1399   :  { %v1386_v24 = vadd.f32 %v1385_v22, %v4241_v49  ;;  %v1458_v26 = vadd.f32 %v1457_v23, %v4175_v53  ;;  %v3521_v27 = vpop.f32.mrb[17].mxu0  ;;  %v3532_v30 = vpop.f32.mrb[17].mxu1 }
0x139b   :  { %1389 = vst [vmem:[%s4608_s6 + $0x2] sm:$0x1] %v1386_v24  ;;  %v1461_v32 = vadd.f32 %v1458_v26, %v334_v31 }
0x139c   :  { %1390 = vst.msk [vmem:[%s4608_s6 + $0x2] sm:$0x1] %vm438_vm2, %v4309_v57 }
0x139d   :  { %v1462_v33 = vsel %vm438_vm2, %v1461_v32, -inf }
0x139e   :  { %1463 = vmax.xlane.f32.xlu1 %v1462_v33 }
0x13af   :  { %1634 = vrot.lane.b32.xlu1 %v1458_v26, %s4045_s15 }
0x142b   :  { %v1464_v34 = vpop.xlane.xlu1 %1463 }
0x142c   :  { %v1465_v35 = vsub.f32 %v1461_v32, %v1464_v34 }
0x142e   :  { %v1466_v36 = vmul.f32 1.442695, %v1465_v35 }
0x142f   :  { %v1635_v59 = vpop.permute.xlu1 %1634 }
0x1430   :  { %3946 = vpow2.f32 %v1466_v36 }
0x143a   :  { %v3947_v37 = vpop.eup %3946 }
0x143b   :  { %1469 = vrot.lane.b32.xlu0 %v3947_v37, %s4044_s14 }
0x14ad   :  { %v1470_v39 = vpop.permute.xlu0 %1469 }
0x14ae   :  { %v1472_v29 = vsel %vm449_vm3, %v1470_v39, 0.0 }
0x14af   :  { %1473 = vadd.xlane.f32.xlu0 %v1472_v29 }
0x153c   :  { %v1474_v42 = vpop.xlane.xlu0 %1473 }
0x153d   :  { %3948 = vrcp.f32 %v1474_v42 }
0x1547   :  { %v3949_v43 = vpop.eup %3948 }
0x1548   :  { %v4361_v44 = vmul.f32 %v3949_v43, %v3947_v37 }
0x154a   :  { %1478 = vrot.lane.b32.xlu0 %v4361_v44, %s4044_s14 }
0x15bc   :  { %v1479_v45 = vpop.permute.xlu0 %1478 }
0x15bd   :  { %3538 = vmatmul.mubr.msk.f32.vlgmr.msra.gmra.mrb[18].mxu0 %vm458_vm4, %v1479_v45 }
0x15be   :  { %3812 = vmatpush3.bf16.msra.mxu0 %v4181_v4  ;;  %3548 = vmatprep.mubr.msk.f32.mxu0 %vm4042_vm1, %v4043_v28 }
0x15bf   :  { %3813 = vmatprep.subr.bf16.mxu0 %v4041_v18 }
0x15c2   :  { %3815 = vmatpush3.bf16.msra.mxu0 %v4184_v6 }
0x15c3   :  { %3822 = vmatprep.subr.bf16.mxu0 %v4041_v18 }
0x1690   :  { %v1548_v46 = vpop.f32.mrb[18].mxu0 }
0x1691   :  { %v1552_v47 = vadd.f32 %v1548_v46, %v334_v31  ;;  %v3539_v48 = vpop.f32.mrb[19].mxu0 }
0x1693   :  { %3549 = vmatmul.mubr.msk.f32.vlgmr.msra.gmra.mrb[20].mxu0 %vm82_vm0, %v1552_v47 }
0x1694   :  { %3824 = vmatpush3.bf16.msra.mxu0 %v4116_v20  ;;  %3570 = vmatprep.mubr.msk.f32.mxu0 %vm4042_vm1, %v4043_v28 }
0x1695   :  { %3825 = vmatprep.subr.bf16.mxu0 %v4041_v18 }
0x1698   :  { %3827 = vmatpush3.bf16.msra.mxu0 %v4129_v25 }
0x1699   :  { %3837 = vmatprep.subr.bf16.mxu0 %v4041_v18 }
0x1766   :  { %v1622_v50 = vpop.f32.mrb[20].mxu0 }
0x1767   :  { %v1623_v51 = vadd.f32 %v1622_v50, %v4207_v13  ;;  %v3550_v52 = vpop.f32.mrb[21].mxu0 }
0x1769   :  { %v1626_v54 = vadd.f32 %v1623_v51, %v1458_v26 }
0x176b   :  { %v3171_v55 = vmul.f32 -1.442695, %v1626_v54 }
0x176d   :  { %3950 = vpow2.f32 %v3171_v55 }
0x1777   :  { %v3951_v56 = vpop.eup %3950 }
0x1778   :  { %v1630_v57 = vadd.f32 1.0, %v3951_v56 }
0x177a   :  { %3952 = vrcp.f32 %v1630_v57 }
0x1784   :  { %v3953_v58 = vpop.eup %3952 }
0x1785   :  { %v1637_v60 = vmul.f32 %v3953_v58, %v1635_v59  ;;  %v1644_v0 = vsub.f32 1.0, %v3953_v58  ;;  %v1650_v2 = vmul.f32 %v3953_v58, %v4331_v19 }
0x1787   :  { %1639 = vrot.lane.b32.xlu1 %v1637_v60, %s4045_s15 }
0x17f9   :  { %v1640_v61 = vpop.permute.xlu1 %1639 }
0x17fa   :  { %v1642_v62 = vadd.f32 %v1640_v61, %v1623_v51 }
0x17fc   :  { %3954 = vtanh.f32 %v1642_v62 }
0x1806   :  { %v3955_v63 = vpop.eup %3954 }
0x1807   :  { %1646 = vrot.lane.b32.xlu1 %v3955_v63, %s4046_s17 }
0x1879   :  { %v1647_v1 = vpop.permute.xlu1 %1646 }
0x187a   :  { %v1649_v3 = vmul.f32 %v1647_v1, %v1644_v0  ;;  %v348_v1 = vld [vmem:[%s347_s21] sm:$0x1] }
0x187c   :  { %v4383_v5 = vadd.f32 %v1650_v2, %v1649_v3 }
0x187e   :  { %1653 = vrot.lane.b32.xlu0 %v4383_v5, %s4046_s17 }
0x18f0   :  { %v1654_v7 = vpop.permute.xlu0 %1653 }
0x18f1   :  { %3560 = vmatmul.mubr.msk.f32.vlgmr.msra.gmra.mrb[18].mxu1 %vm82_vm0, %v1654_v7  ;;  %3571 = vmatmul.mubr.msk.f32.vlgmr.msra.gmra.mrb[22].mxu0 %vm82_vm0, %v1654_v7 }
0x18f2   :  { %3830 = vmatpush3.bf16.msra.mxu1 %v4165_v41  ;;  %3577 = vmatprep.mubr.msk.f32.mxu1 %vm4042_vm1, %v4043_v28 }
0x18f3   :  { %3831 = vmatprep.subr.bf16.mxu1 %v4041_v18  ;;  %3839 = vmatpush3.bf16.msra.mxu0 %v4213_v38 }
0x18f4   :  { %3840 = vmatprep.subr.bf16.mxu0 %v4041_v18  ;;  %3599 = vmatprep.mubr.msk.f32.mxu0 %vm4042_vm1, %v4043_v28 }
0x18f7   :  { %3842 = vmatpush3.bf16.msra.mxu0 %v4216_v40 }
0x18f8   :  { %3849 = vmatprep.subr.bf16.mxu0 %v4041_v18 }
0x19c4   :  { %v1723_v8 = vpop.f32.mrb[18].mxu1  ;;  %v1795_v9 = vpop.f32.mrb[22].mxu0 }
0x19c5   :  { %v1724_v10 = vadd.f32 %v1723_v8, %v4241_v49  ;;  %v1796_v11 = vadd.f32 %v1795_v9, %v4175_v53  ;;  %v3561_v12 = vpop.f32.mrb[19].mxu1  ;;  %v3572_v14 = vpop.f32.mrb[23].mxu0 }
0x19c7   :  { %1727 = vst [vmem:[%s4608_s6 + $0x3] sm:$0x1] %v1724_v10  ;;  %v1799_v16 = vadd.f32 %v1796_v11, %v341_v15 }
0x19c8   :  { %1728 = vst.msk [vmem:[%s4608_s6 + $0x3] sm:$0x1] %vm438_vm2, %v4361_v44 }
0x19c9   :  { %v1800_v17 = vsel %vm438_vm2, %v1799_v16, -inf }
0x19ca   :  { %1801 = vmax.xlane.f32.xlu1 %v1800_v17 }
0x19db   :  { %1972 = vrot.lane.b32.xlu1 %v1796_v11, %s4045_s15 }
0x1a57   :  { %v1802_v19 = vpop.xlane.xlu1 %1801 }
0x1a58   :  { %v1803_v21 = vsub.f32 %v1799_v16, %v1802_v19 }
0x1a5a   :  { %v1804_v22 = vmul.f32 1.442695, %v1803_v21 }
0x1a5b   :  { %v1973_v46 = vpop.permute.xlu1 %1972 }
0x1a5c   :  { %3956 = vpow2.f32 %v1804_v22 }
0x1a66   :  { %v3957_v23 = vpop.eup %3956 }
0x1a67   :  { %1807 = vrot.lane.b32.xlu0 %v3957_v23, %s4044_s14 }
0x1ad9   :  { %v1808_v24 = vpop.permute.xlu0 %1807 }
0x1ada   :  { %v1810_v26 = vsel %vm449_vm3, %v1808_v24, 0.0 }
0x1adb   :  { %1811 = vadd.xlane.f32.xlu0 %v1810_v26 }
0x1b68   :  { %v1812_v27 = vpop.xlane.xlu0 %1811 }
0x1b69   :  { %3958 = vrcp.f32 %v1812_v27 }
0x1b73   :  { %v3959_v30 = vpop.eup %3958 }
0x1b74   :  { %v4413_v31 = vmul.f32 %v3959_v30, %v3957_v23 }
0x1b76   :  { %1816 = vrot.lane.b32.xlu0 %v4413_v31, %s4044_s14 }
0x1be8   :  { %v1817_v32 = vpop.permute.xlu0 %1816 }
0x1be9   :  { %3578 = vmatmul.mubr.msk.f32.vlgmr.msra.gmra.mrb[20].mxu1 %vm458_vm4, %v1817_v32 }
0x1bea   :  { %3833 = vmatpush3.bf16.msra.mxu1 %v4181_v4  ;;  %3588 = vmatprep.mubr.msk.f32.mxu1 %vm4042_vm1, %v4043_v28 }
0x1beb   :  { %3834 = vmatprep.subr.bf16.mxu1 %v4041_v18 }
0x1bee   :  { %3836 = vmatpush3.bf16.msra.mxu1 %v4184_v6 }
0x1bef   :  { %3843 = vmatprep.subr.bf16.mxu1 %v4041_v18 }
0x1cbc   :  { %v1886_v33 = vpop.f32.mrb[20].mxu1 }
0x1cbd   :  { %v1890_v34 = vadd.f32 %v1886_v33, %v341_v15  ;;  %v3579_v35 = vpop.f32.mrb[21].mxu1 }
0x1cbf   :  { %3589 = vmatmul.mubr.msk.f32.vlgmr.msra.gmra.mrb[22].mxu1 %vm82_vm0, %v1890_v34 }
0x1cc0   :  { %3845 = vmatpush3.bf16.msra.mxu1 %v4116_v20  ;;  %3610 = vmatprep.mubr.msk.f32.mxu1 %vm4042_vm1, %v4043_v28 }
0x1cc1   :  { %3846 = vmatprep.subr.bf16.mxu1 %v4041_v18 }
0x1cc4   :  { %3848 = vmatpush3.bf16.msra.mxu1 %v4129_v25 }
0x1cc5   :  { %3858 = vmatprep.subr.bf16.mxu1 %v4041_v18 }
0x1d92   :  { %v1960_v36 = vpop.f32.mrb[22].mxu1 }
0x1d93   :  { %v1961_v37 = vadd.f32 %v1960_v36, %v4207_v13  ;;  %v3590_v39 = vpop.f32.mrb[23].mxu1 }
0x1d95   :  { %v1964_v29 = vadd.f32 %v1961_v37, %v1796_v11 }
0x1d97   :  { %v3176_v42 = vmul.f32 -1.442695, %v1964_v29 }
0x1d99   :  { %3960 = vpow2.f32 %v3176_v42 }
0x1da3   :  { %v3961_v43 = vpop.eup %3960 }
0x1da4   :  { %v1968_v44 = vadd.f32 1.0, %v3961_v43 }
0x1da6   :  { %3962 = vrcp.f32 %v1968_v44 }
0x1db0   :  { %v3963_v45 = vpop.eup %3962 }
0x1db1   :  { %v1975_v47 = vmul.f32 %v3963_v45, %v1973_v46  ;;  %v1982_v52 = vsub.f32 1.0, %v3963_v45  ;;  %v1988_v55 = vmul.f32 %v3963_v45, %v4383_v5 }
0x1db3   :  { %1977 = vrot.lane.b32.xlu1 %v1975_v47, %s4045_s15  ;;  %v4507_v47 = vld [vmem:[%s4607_s5 + $0x1] sm:$0x1] }
0x1e25   :  { %v1978_v48 = vpop.permute.xlu1 %1977 }
0x1e26   :  { %v1980_v50 = vadd.f32 %v1978_v48, %v1961_v37 }
0x1e28   :  { %3964 = vtanh.f32 %v1980_v50 }
0x1e32   :  { %v3965_v51 = vpop.eup %3964 }
0x1e33   :  { %1984 = vrot.lane.b32.xlu1 %v3965_v51, %s4046_s17 }
0x1ea5   :  { %v1985_v54 = vpop.permute.xlu1 %1984 }
0x1ea6   :  { %v1987_v56 = vmul.f32 %v1985_v54, %v1982_v52  ;;  %v355_v52 = vld [vmem:[%s354_s29] sm:$0x1] }
0x1ea8   :  { %v4435_v57 = vadd.f32 %v1988_v55, %v1987_v56 }
0x1eaa   :  { %1991 = vrot.lane.b32.xlu0 %v4435_v57, %s4046_s17 }
0x1f1c   :  { %v1992_v58 = vpop.permute.xlu0 %1991 }
0x1f1d   :  { %3600 = vmatmul.mubr.msk.f32.vlgmr.msra.gmra.mrb[24].mxu0 %vm82_vm0, %v1992_v58  ;;  %3611 = vmatmul.mubr.msk.f32.vlgmr.msra.gmra.mrb[24].mxu1 %vm82_vm0, %v1992_v58 }
0x1f1e   :  { %3851 = vmatpush3.bf16.msra.mxu0 %v4165_v41  ;;  %3617 = vmatprep.mubr.msk.f32.mxu0 %vm4042_vm1, %v4043_v28 }
0x1f1f   :  { %3852 = vmatprep.subr.bf16.mxu0 %v4041_v18  ;;  %3860 = vmatpush3.bf16.msra.mxu1 %v4213_v38 }
0x1f20   :  { %3861 = vmatprep.subr.bf16.mxu1 %v4041_v18  ;;  %3639 = vmatprep.mubr.msk.f32.mxu1 %vm4042_vm1, %v4043_v28 }
0x1f23   :  { %3863 = vmatpush3.bf16.msra.mxu1 %v4216_v40 }
0x1f24   :  { %3870 = vmatprep.subr.bf16.mxu1 %v4041_v18 }
0x1ff0   :  { %v2061_v59 = vpop.f32.mrb[24].mxu0  ;;  %v2133_v60 = vpop.f32.mrb[24].mxu1 }
0x1ff1   :  { %v2062_v61 = vadd.f32 %v2061_v59, %v4241_v49  ;;  %v2134_v62 = vadd.f32 %v2133_v60, %v4175_v53  ;;  %v3601_v63 = vpop.f32.mrb[25].mxu0  ;;  %v3612_v0 = vpop.f32.mrb[25].mxu1 }
0x1ff3   :  { %2065 = vst [vmem:[%s4608_s6 + $0x4] sm:$0x1] %v2062_v61  ;;  %v2137_v2 = vadd.f32 %v2134_v62, %v348_v1 }
0x1ff4   :  { %2066 = vst.msk [vmem:[%s4608_s6 + $0x4] sm:$0x1] %vm438_vm2, %v4413_v31 }
0x1ff5   :  { %v2138_v3 = vsel %vm438_vm2, %v2137_v2, -inf }
0x1ff6   :  { %2139 = vmax.xlane.f32.xlu1 %v2138_v3 }
0x2007   :  { %2310 = vrot.lane.b32.xlu1 %v2134_v62, %s4045_s15 }
0x2083   :  { %v2140_v53 = vpop.xlane.xlu1 %2139 }
0x2084   :  { %v2141_v5 = vsub.f32 %v2137_v2, %v2140_v53 }
0x2086   :  { %v2142_v7 = vmul.f32 1.442695, %v2141_v5 }
0x2087   :  { %v2311_v32 = vpop.permute.xlu1 %2310 }
0x2088   :  { %3966 = vpow2.f32 %v2142_v7  ;;  %v4543_v7 = vld [vmem:[%s4607_s5 + $0x2] sm:$0x1] }
0x2092   :  { %v3967_v8 = vpop.eup %3966 }
0x2093   :  { %2145 = vrot.lane.b32.xlu0 %v3967_v8, %s4044_s14 }
0x2105   :  { %v2146_v9 = vpop.permute.xlu0 %2145 }
0x2106   :  { %v2148_v10 = vsel %vm449_vm3, %v2146_v9, 0.0 }
0x2107   :  { %2149 = vadd.xlane.f32.xlu0 %v2148_v10 }
0x2194   :  { %v2150_v11 = vpop.xlane.xlu0 %2149 }
0x2195   :  { %3968 = vrcp.f32 %v2150_v11 }
0x219f   :  { %v3969_v12 = vpop.eup %3968 }
0x21a0   :  { %v4465_v14 = vmul.f32 %v3969_v12, %v3967_v8 }
0x21a2   :  { %2154 = vrot.lane.b32.xlu0 %v4465_v14, %s4044_s14 }
0x2214   :  { %v2155_v15 = vpop.permute.xlu0 %2154 }
0x2215   :  { %3618 = vmatmul.mubr.msk.f32.vlgmr.msra.gmra.mrb[26].mxu0 %vm458_vm4, %v2155_v15 }
0x2216   :  { %3854 = vmatpush3.bf16.msra.mxu0 %v4181_v4  ;;  %3628 = vmatprep.mubr.msk.f32.mxu0 %vm4042_vm1, %v4043_v28 }
0x2217   :  { %3855 = vmatprep.subr.bf16.mxu0 %v4041_v18 }
0x221a   :  { %3857 = vmatpush3.bf16.msra.mxu0 %v4184_v6 }
0x221b   :  { %3864 = vmatprep.subr.bf16.mxu0 %v4041_v18 }
0x22e8   :  { %v2224_v16 = vpop.f32.mrb[26].mxu0 }
0x22e9   :  { %v2228_v17 = vadd.f32 %v2224_v16, %v348_v1  ;;  %v3619_v19 = vpop.f32.mrb[27].mxu0 }
0x22eb   :  { %3629 = vmatmul.mubr.msk.f32.vlgmr.msra.gmra.mrb[28].mxu0 %vm82_vm0, %v2228_v17 }
0x22ec   :  { %3866 = vmatpush3.bf16.msra.mxu0 %v4116_v20  ;;  %3650 = vmatprep.mubr.msk.f32.mxu0 %vm4042_vm1, %v4043_v28 }
0x22ed   :  { %3867 = vmatprep.subr.bf16.mxu0 %v4041_v18 }
0x22f0   :  { %3869 = vmatpush3.bf16.msra.mxu0 %v4129_v25 }
0x22f1   :  { %3879 = vmatprep.subr.bf16.mxu0 %v4041_v18 }
0x23be   :  { %v2298_v21 = vpop.f32.mrb[28].mxu0 }
0x23bf   :  { %v2299_v22 = vadd.f32 %v2298_v21, %v4207_v13  ;;  %v3630_v23 = vpop.f32.mrb[29].mxu0 }
0x23c1   :  { %v2302_v24 = vadd.f32 %v2299_v22, %v2134_v62 }
0x23c3   :  { %v3181_v26 = vmul.f32 -1.442695, %v2302_v24 }
0x23c5   :  { %3970 = vpow2.f32 %v3181_v26 }
0x23cf   :  { %v3971_v27 = vpop.eup %3970 }
0x23d0   :  { %v2306_v30 = vadd.f32 1.0, %v3971_v27 }
0x23d2   :  { %3972 = vrcp.f32 %v2306_v30 }
0x23dc   :  { %v3973_v31 = vpop.eup %3972 }
0x23dd   :  { %v2313_v33 = vmul.f32 %v3973_v31, %v2311_v32  ;;  %v2320_v37 = vsub.f32 1.0, %v3973_v31  ;;  %v2326_v39 = vmul.f32 %v3973_v31, %v4435_v57 }
0x23df   :  { %2315 = vrot.lane.b32.xlu1 %v2313_v33, %s4045_s15 }
0x2451   :  { %v2316_v34 = vpop.permute.xlu1 %2315 }
0x2452   :  { %v2318_v35 = vadd.f32 %v2316_v34, %v2299_v22  ;;  %v362_v34 = vld [vmem:[%s361_s11] sm:$0x1] }
0x2454   :  { %3974 = vtanh.f32 %v2318_v35 }
0x245e   :  { %v3975_v36 = vpop.eup %3974 }
0x245f   :  { %2322 = vrot.lane.b32.xlu1 %v3975_v36, %s4046_s17 }
0x24d1   :  { %v2323_v13 = vpop.permute.xlu1 %2322 }
0x24d2   :  { %v2325_v29 = vmul.f32 %v2323_v13, %v2320_v37 }
0x24d4   :  { %v4487_v42 = vadd.f32 %v2326_v39, %v2325_v29 }
0x24d6   :  { %2329 = vrot.lane.b32.xlu0 %v4487_v42, %s4046_s17 }
0x2548   :  { %v2330_v43 = vpop.permute.xlu0 %2329 }
0x2549   :  { %3640 = vmatmul.mubr.msk.f32.vlgmr.msra.gmra.mrb[26].mxu1 %vm82_vm0, %v2330_v43  ;;  %3651 = vmatmul.mubr.msk.f32.vlgmr.msra.gmra.mrb[30].mxu0 %vm82_vm0, %v2330_v43 }
0x254a   :  { %3872 = vmatpush3.bf16.msra.mxu1 %v4165_v41  ;;  %3657 = vmatprep.mubr.msk.f32.mxu1 %vm4042_vm1, %v4043_v28 }
0x254b   :  { %3873 = vmatprep.subr.bf16.mxu1 %v4041_v18  ;;  %3881 = vmatpush3.bf16.msra.mxu0 %v4213_v38 }
0x254c   :  { %3882 = vmatprep.subr.bf16.mxu0 %v4041_v18  ;;  %3679 = vmatprep.mubr.msk.f32.mxu0 %vm4042_vm1, %v4043_v28 }
0x254f   :  { %3884 = vmatpush3.bf16.msra.mxu0 %v4216_v40 }
0x2550   :  { %3891 = vmatprep.subr.bf16.mxu0 %v4041_v18 }
0x261c   :  { %v2399_v44 = vpop.f32.mrb[26].mxu1  ;;  %v2471_v45 = vpop.f32.mrb[30].mxu0 }
0x261d   :  { %v2400_v46 = vadd.f32 %v2399_v44, %v4241_v49  ;;  %v2472_v48 = vadd.f32 %v4507_v47, %v2471_v45  ;;  %v3641_v50 = vpop.f32.mrb[27].mxu1  ;;  %v3652_v51 = vpop.f32.mrb[31].mxu0 }
0x261f   :  { %2403 = vst [vmem:[%s4608_s6 + $0x5] sm:$0x1] %v2400_v46  ;;  %v2475_v54 = vadd.f32 %v2472_v48, %v355_v52 }
0x2620   :  { %2404 = vst.msk [vmem:[%s4608_s6 + $0x5] sm:$0x1] %vm438_vm2, %v4465_v14 }
0x2621   :  { %v2476_v55 = vsel %vm438_vm2, %v2475_v54, -inf }
0x2622   :  { %2477 = vmax.xlane.f32.xlu1 %v2476_v55 }
0x2633   :  { %2648 = vrot.lane.b32.xlu1 %v2472_v48, %s4045_s15 }
0x26af   :  { %v2478_v56 = vpop.xlane.xlu1 %2477 }
0x26b0   :  { %v2479_v57 = vsub.f32 %v2475_v54, %v2478_v56 }
0x26b2   :  { %v2480_v58 = vmul.f32 1.442695, %v2479_v57 }
0x26b3   :  { %v2649_v15 = vpop.permute.xlu1 %2648 }
0x26b4   :  { %3976 = vpow2.f32 %v2480_v58 }
0x26be   :  { %v3977_v59 = vpop.eup %3976 }
0x26bf   :  { %2483 = vrot.lane.b32.xlu0 %v3977_v59, %s4044_s14 }
0x2731   :  { %v2484_v60 = vpop.permute.xlu0 %2483 }
0x2732   :  { %v2486_v61 = vsel %vm449_vm3, %v2484_v60, 0.0 }
0x2733   :  { %2487 = vadd.xlane.f32.xlu0 %v2486_v61 }
0x27c0   :  { %v2488_v62 = vpop.xlane.xlu0 %2487 }
0x27c1   :  { %3978 = vrcp.f32 %v2488_v62 }
0x27cb   :  { %v3979_v63 = vpop.eup %3978 }
0x27cc   :  { %v4522_v0 = vmul.f32 %v3979_v63, %v3977_v59 }
0x27ce   :  { %2492 = vrot.lane.b32.xlu0 %v4522_v0, %s4044_s14 }
0x2840   :  { %v2493_v1 = vpop.permute.xlu0 %2492 }
0x2841   :  { %3658 = vmatmul.mubr.msk.f32.vlgmr.msra.gmra.mrb[28].mxu1 %vm458_vm4, %v2493_v1 }
0x2842   :  { %3875 = vmatpush3.bf16.msra.mxu1 %v4181_v4  ;;  %3668 = vmatprep.mubr.msk.f32.mxu1 %vm4042_vm1, %v4043_v28 }
0x2843   :  { %3876 = vmatprep.subr.bf16.mxu1 %v4041_v18 }
0x2846   :  { %3878 = vmatpush3.bf16.msra.mxu1 %v4184_v6 }
0x2847   :  { %3885 = vmatprep.subr.bf16.mxu1 %v4041_v18 }
0x2914   :  { %v2562_v2 = vpop.f32.mrb[28].mxu1 }
0x2915   :  { %v2566_v3 = vadd.f32 %v2562_v2, %v355_v52  ;;  %v3659_v53 = vpop.f32.mrb[29].mxu1 }
0x2917   :  { %3669 = vmatmul.mubr.msk.f32.vlgmr.msra.gmra.mrb[30].mxu1 %vm82_vm0, %v2566_v3  ;;  %v3998_v3 = vld [vmem:[%s4607_s5 + $0x3] sm:$0x1] }
0x2918   :  { %3887 = vmatpush3.bf16.msra.mxu1 %v4116_v20  ;;  %3690 = vmatprep.mubr.msk.f32.mxu1 %vm4042_vm1, %v4043_v28 }
0x2919   :  { %3888 = vmatprep.subr.bf16.mxu1 %v4041_v18 }
0x291c   :  { %3890 = vmatpush3.bf16.msra.mxu1 %v4129_v25 }
0x291d   :  { %3900 = vmatprep.subr.bf16.mxu1 %v4041_v18 }
0x29ea   :  { %v2636_v5 = vpop.f32.mrb[30].mxu1 }
0x29eb   :  { %v2637_v8 = vadd.f32 %v4543_v7, %v2636_v5  ;;  %v3670_v9 = vpop.f32.mrb[31].mxu1 }
0x29ed   :  { %v2640_v10 = vadd.f32 %v2637_v8, %v2472_v48 }
0x29ef   :  { %v3186_v20 = vmul.f32 -1.442695, %v2640_v10 }
0x29f1   :  { %3980 = vpow2.f32 %v3186_v20 }
0x29fb   :  { %v3981_v11 = vpop.eup %3980 }
0x29fc   :  { %v2644_v12 = vadd.f32 1.0, %v3981_v11 }
0x29fe   :  { %3982 = vrcp.f32 %v2644_v12 }
0x2a08   :  { %v3983_v14 = vpop.eup %3982 }
0x2a09   :  { %v2651_v25 = vmul.f32 %v3983_v14, %v2649_v15  ;;  %v2658_v21 = vsub.f32 1.0, %v3983_v14  ;;  %v2664_v23 = vmul.f32 %v3983_v14, %v4487_v42 }
0x2a0b   :  { %2653 = vrot.lane.b32.xlu1 %v2651_v25, %s4045_s15 }
0x2a7d   :  { %v2654_v16 = vpop.permute.xlu1 %2653 }
0x2a7e   :  { %v2656_v17 = vadd.f32 %v2654_v16, %v2637_v8 }
0x2a80   :  { %3984 = vtanh.f32 %v2656_v17 }
0x2a8a   :  { %v3985_v19 = vpop.eup %3984 }
0x2a8b   :  { %2660 = vrot.lane.b32.xlu1 %v3985_v19, %s4046_s17 }
0x2afd   :  { %v2661_v22 = vpop.permute.xlu1 %2660 }
0x2afe   :  { %v2663_v24 = vmul.f32 %v2661_v22, %v2658_v21 }
0x2b00   :  { %v4549_v26 = vadd.f32 %v2664_v23, %v2663_v24 }
0x2b02   :  { %2667 = vrot.lane.b32.xlu0 %v4549_v26, %s4046_s17 }
0x2b74   :  { %v2668_v27 = vpop.permute.xlu0 %2667 }
0x2b75   :  { %3680 = vmatmul.mubr.msk.f32.vlgmr.msra.gmra.mrb[32].mxu0 %vm82_vm0, %v2668_v27  ;;  %3691 = vmatmul.mubr.msk.f32.vlgmr.msra.gmra.mrb[32].mxu1 %vm82_vm0, %v2668_v27 }
0x2b76   :  { %3893 = vmatpush3.bf16.msra.mxu0 %v4165_v41  ;;  %3697 = vmatprep.mubr.msk.f32.mxu0 %vm4042_vm1, %v4043_v28 }
0x2b77   :  { %3894 = vmatprep.subr.bf16.mxu0 %v4041_v18  ;;  %3902 = vmatpush3.bf16.msra.mxu1 %v4213_v38 }
0x2b78   :  { %3903 = vmatprep.subr.bf16.mxu1 %v4041_v18  ;;  %3719 = vmatprep.mubr.msk.f32.mxu1 %vm4042_vm1, %v4043_v28 }
0x2b7b   :  { %3905 = vmatpush3.bf16.msra.mxu1 %v4216_v40 }
0x2c48   :  { %v2737_v41 = vpop.f32.mrb[32].mxu0  ;;  %v2809_v30 = vpop.f32.mrb[32].mxu1 }
0x2c49   :  { %v2738_v31 = vadd.f32 %v2737_v41, %v4241_v49  ;;  %v2810_v32 = vadd.f32 %v4507_v47, %v2809_v30  ;;  %v3681_v33 = vpop.f32.mrb[33].mxu0  ;;  %v3692_v38 = vpop.f32.mrb[33].mxu1 }
0x2c4b   :  { %2741 = vst [vmem:[%s4608_s6 + $0x6] sm:$0x1] %v2738_v31  ;;  %v2813_v40 = vadd.f32 %v2810_v32, %v362_v34 }
0x2c4c   :  { %2742 = vst.msk [vmem:[%s4608_s6 + $0x6] sm:$0x1] %vm438_vm2, %v4522_v0 }
0x2c4d   :  { %v2814_v35 = vsel %vm438_vm2, %v2813_v40, -inf }
0x2c4e   :  { %2815 = vmax.xlane.f32.xlu1 %v2814_v35 }
0x2c5f   :  { %2986 = vrot.lane.b32.xlu1 %v2810_v32, %s4045_s15 }
0x2cdb   :  { %v2816_v49 = vpop.xlane.xlu1 %2815 }
0x2cdc   :  { %v2817_v36 = vsub.f32 %v2813_v40, %v2816_v49 }
0x2cde   :  { %v2818_v37 = vmul.f32 1.442695, %v2817_v36 }
0x2cdf   :  { %v2987_v57 = vpop.permute.xlu1 %2986 }
0x2ce0   :  { %3986 = vpow2.f32 %v2818_v37 }
0x2cea   :  { %v3987_v13 = vpop.eup %3986 }
0x2ceb   :  { %2821 = vrot.lane.b32.xlu0 %v3987_v13, %s4044_s14 }
0x2d5d   :  { %v2822_v39 = vpop.permute.xlu0 %2821 }
0x2d5e   :  { %v2824_v29 = vsel %vm449_vm3, %v2822_v39, 0.0 }
0x2d5f   :  { %2825 = vadd.xlane.f32.xlu0 %v2824_v29 }
0x2dec   :  { %v2826_v42 = vpop.xlane.xlu0 %2825 }
0x2ded   :  { %3988 = vrcp.f32 %v2826_v42 }
0x2df7   :  { %v3989_v43 = vpop.eup %3988 }
0x2df8   :  { %v2828_v44 = vmul.f32 %v3989_v43, %v3987_v13 }
0x2dfa   :  { %2830 = vrot.lane.b32.xlu0 %v2828_v44, %s4044_s14 }
0x2e6c   :  { %v2831_v45 = vpop.permute.xlu0 %2830 }
0x2e6d   :  { %3698 = vmatmul.mubr.msk.f32.vlgmr.msra.gmra.mrb[34].mxu0 %vm458_vm4, %v2831_v45 }
0x2e6e   :  { %3896 = vmatpush3.bf16.msra.mxu0 %v4181_v4  ;;  %3708 = vmatprep.mubr.msk.f32.mxu0 %vm4042_vm1, %v4043_v28 }
0x2e6f   :  { %3897 = vmatprep.subr.bf16.mxu0 %v4041_v18 }
0x2e72   :  { %3899 = vmatpush3.bf16.msra.mxu0 %v4184_v6 }
0x2f40   :  { %v2900_v46 = vpop.f32.mrb[34].mxu0 }
0x2f41   :  { %v2904_v47 = vadd.f32 %v2900_v46, %v362_v34  ;;  %v3699_v48 = vpop.f32.mrb[35].mxu0 }
0x2f43   :  { %3709 = vmatmul.mubr.msk.f32.vlgmr.msra.gmra.mrb[36].mxu0 %vm82_vm0, %v2904_v47 }
0x3016   :  { %v2974_v50 = vpop.f32.mrb[36].mxu0 }
0x3017   :  { %v2975_v51 = vadd.f32 %v4543_v7, %v2974_v50  ;;  %v3710_v52 = vpop.f32.mrb[37].mxu0 }
0x3019   :  { %v2978_v54 = vadd.f32 %v2975_v51, %v2810_v32 }
0x301b   :  { %v3191_v55 = vmul.f32 -1.442695, %v2978_v54 }
0x301d   :  { %3990 = vpow2.f32 %v3191_v55 }
0x3027   :  { %v3991_v4 = vpop.eup %3990 }
0x3028   :  { %v2982_v56 = vadd.f32 1.0, %v3991_v4 }
0x302a   :  { %3992 = vrcp.f32 %v2982_v56 }
0x3034   :  { %v3993_v28 = vpop.eup %3992 }
0x3035   :  { %v2989_v18 = vmul.f32 %v3993_v28, %v2987_v57  ;;  %v2996_v60 = vsub.f32 1.0, %v3993_v28  ;;  %v3002_v62 = vmul.f32 %v3993_v28, %v4549_v26 }
0x3037   :  { %2991 = vrot.lane.b32.xlu1 %v2989_v18, %s4045_s15 }
0x30a9   :  { %v2992_v6 = vpop.permute.xlu1 %2991 }
0x30aa   :  { %v2994_v58 = vadd.f32 %v2992_v6, %v2975_v51 }
0x30ac   :  { %3994 = vtanh.f32 %v2994_v58 }
0x30b6   :  { %v3995_v59 = vpop.eup %3994 }
0x30b7   :  { %2998 = vrot.lane.b32.xlu1 %v3995_v59, %s4046_s17 }
0x3129   :  { %v2999_v61 = vpop.permute.xlu1 %2998 }
0x312a   :  { %v3001_v63 = vmul.f32 %v2999_v61, %v2996_v60 }
0x312c   :  { %v3003_v0 = vadd.f32 %v3002_v62, %v3001_v63 }
0x312e   :  { %3005 = vrot.lane.b32.xlu0 %v3003_v0, %s4046_s17 }
0x31a0   :  { %v3006_v1 = vpop.permute.xlu0 %3005 }
0x31a1   :  { %3720 = vmatmul.mubr.msk.f32.vlgmr.msra.gmra.mrb[34].mxu1 %vm82_vm0, %v3006_v1 }
0x3274   :  { %v3075_v2 = vpop.f32.mrb[34].mxu1 }
0x3275   :  { %v3076_v53 = vadd.f32 %v3998_v3, %v3075_v2  ;;  %v3721_v5 = vpop.f32.mrb[35].mxu1 }
0x3277   :  { %3079 = vst [vmem:[%s4608_s6 + $0x7] sm:$0x1] %v3076_v53 }
0x3278   :  { %3080 = vst.msk [vmem:[%s4608_s6 + $0x7] sm:$0x1] %vm438_vm2, %v2828_v44 }
0x3279   :  { %3085 = vsyncpa [#allocation4], 1 }
0x327a   :  { %3086 = vsyncpa [#allocation5], 1 }

</bundles_post_ra>
